<compile_context>
chip_gen: v7x
topology: tpu7x:2x2x1
jax: 0.10.0
libtpu: 0.0.40
codegen_flags: <defaults>
</compile_context>

<pallas_src>
import functools

import jax
import jax.numpy as jnp
import numpy as np
from jax.experimental import pallas as pl
from jax.experimental.pallas import tpu as pltpu


def evg_kernel(cls_ref, ent_ref, wq_ref, bq_ref, wkv_ref, bkv_ref,
               mask_ref, wo_ref, bo_ref, o_ref, *, top_k):
    tb, n, d = ent_ref.shape
    H = wq_ref.shape[1]

    cls = cls_ref[...]                               # (TB, D)
    # N=8 per sample -> this merge is sublane-tile aligned (no relayout).
    ent = ent_ref[...].reshape(tb * n, d)            # (TB*N, D)

    # --- Projections: two MXU matmuls with stacked-sample M dims.
    #     (1/sqrt(head_dim) already folded into wq/bq by the wrapper.)
    q = jnp.dot(cls, wq_ref[...], preferred_element_type=jnp.float32) + bq_ref[...]     # (TB, H)
    kv = jnp.dot(ent, wkv_ref[...], preferred_element_type=jnp.float32) + bkv_ref[...]  # (TB*N, 2H)
    kv = kv.reshape(tb, n, 2 * H)
    kmat = kv[:, :, :H]                              # (TB, N, H)
    vmat = kv[:, :, H:]                              # (TB, N, H)

    hm = mask_ref[...]                               # (nh, H) block-diag head lane selector

    # Per-head queries via the head mask (no per-head lane slicing): (TB, nh, H).
    q3 = q[:, None, :] * hm[None, :, :]

    # Attention logits for all samples/heads at once: (TB, nh, N).
    logits = jnp.einsum('bhd,bnd->bhn', q3, kmat, preferred_element_type=jnp.float32)

    # --- Softmax over entities (f32, exact reciprocal keeps 1e-5 parity).
    m = jnp.max(logits, axis=-1, keepdims=True)
    e = jnp.exp(logits - m)
    denom = jnp.sum(e, axis=-1, keepdims=True)
    scores = e * pl.reciprocal(denom, approx=False)  # (TB, nh, N)

    # --- Top-k: k passes of (max, first-index) selection on post-softmax scores.
    #     O(k*N), no O(N^2) compare tensor, ties pick the lowest index
    #     (torch.topk semantics); ranking matches the reference (post-softmax).
    lane = jax.lax.broadcasted_iota(jnp.int32, scores.shape, 2)

    def take_one(_, carry):
        remaining, keep = carry
        cur_max = jnp.max(remaining, axis=-1, keepdims=True)
        is_max = remaining == cur_max
        first = jnp.min(jnp.where(is_max, lane, n), axis=-1, keepdims=True)
        sel = lane == first
        remaining = jnp.where(sel, -jnp.inf, remaining)
        keep = jnp.where(sel, 1.0, keep)
        return remaining, keep

    _, keep = jax.lax.fori_loop(0, top_k, take_one,
                                (scores, jnp.zeros_like(scores)), unroll=True)
    kept = keep * scores                             # selected softmax scores, zeros elsewhere

    # --- Weighted sum of selected values, all samples/heads at once: (TB, nh, H).
    wv = jnp.einsum('bhn,bnd->bhd', kept, vmat, preferred_element_type=jnp.float32)
    # Pick each head's own lanes and collapse heads -> concat vector per sample.
    concat = jnp.sum(hm[None, :, :] * wv, axis=1)    # (TB, H)

    out = jnp.dot(concat, wo_ref[...], preferred_element_type=jnp.float32) + bo_ref[...]
    o_ref[...] = out                                 # (TB, output_dim)


def prepare_evg_params(params, num_heads):
    """One-time prep: fold 1/sqrt(head_dim) into Q, fuse K/V weights, build head mask."""
    hidden_dim = params["wq"].shape[1]
    assert hidden_dim % num_heads == 0, "hidden_dim must be divisible by num_heads"
    head_dim = hidden_dim // num_heads
    scale = 1.0 / (head_dim ** 0.5)
    head_mask = (jnp.arange(hidden_dim) // head_dim == jnp.arange(num_heads)[:, None])
    return dict(
        wq=params["wq"] * scale, bq=params["bq"] * scale,
        wkv=jnp.concatenate([params["wk"], params["wv"]], axis=1),
        bkv=jnp.concatenate([params["bk"], params["bv"]], axis=1),
        head_mask=head_mask.astype(jnp.float32),      # (nh, H)
        wo=params["wo"], bo=params["bo"],
    )


def multi_head_evg_pallas_batched(class_embeddings, entity_embeddings, prepared,
                                  *, num_heads, top_k, batch_block=8):
    """class_embeddings: (B, D); entity_embeddings: (B, N, D) -> (B, output_dim)."""
    B, D = class_embeddings.shape
    _, N, _ = entity_embeddings.shape
    output_dim = prepared["wo"].shape[1]
    k = min(top_k, N)

    TB = batch_block
    B_pad = ((B + TB - 1) // TB) * TB
    if B_pad != B:
        pad = B_pad - B
        class_embeddings = jnp.pad(class_embeddings, ((0, pad), (0, 0)))
        entity_embeddings = jnp.pad(entity_embeddings, ((0, pad), (0, 0), (0, 0)))

    kernel = functools.partial(evg_kernel, top_k=k)

    def resident(arr):
        # Full-array block, constant index_map -> stays in VMEM across the grid.
        return pl.BlockSpec(arr.shape, lambda b: (0,) * arr.ndim)

    out = pl.pallas_call(
        kernel,
        out_shape=jax.ShapeDtypeStruct((B_pad, output_dim), jnp.float32),
        grid_spec=pltpu.PrefetchScalarGridSpec(
            num_scalar_prefetch=0,
            grid=(B_pad // TB,),
            in_specs=[
                pl.BlockSpec((TB, D), lambda b: (b, 0)),
                pl.BlockSpec((TB, N, D), lambda b: (b, 0, 0)),
                resident(prepared["wq"]), resident(prepared["bq"]),
                resident(prepared["wkv"]), resident(prepared["bkv"]),
                resident(prepared["head_mask"]),
                resident(prepared["wo"]), resident(prepared["bo"]),
            ],
            out_specs=pl.BlockSpec((TB, output_dim), lambda b: (b, 0)),
        ),
        compiler_params=pltpu.CompilerParams(
            dimension_semantics=("parallel",)),  # independent samples -> dual-TC on v7x
    )(class_embeddings.astype(jnp.float32), entity_embeddings.astype(jnp.float32),
      prepared["wq"], prepared["bq"], prepared["wkv"], prepared["bkv"],
      prepared["head_mask"], prepared["wo"], prepared["bo"])
    return out[:B]


def multi_head_evg_pallas(class_embedding, entity_embeddings, prepared,
                          *, num_heads, top_k):
    """Single-sample API matching the PyTorch forward: returns (output_dim,)."""
    if class_embedding.ndim == 1:
        class_embedding = class_embedding[None, :]
    out = multi_head_evg_pallas_batched(class_embedding, entity_embeddings[None],
                                        prepared, num_heads=num_heads, top_k=top_k)
    return out[0]


def multi_head_evg_ref(class_embedding, entity_embeddings, params,
                       *, num_heads, top_k):
    """Pure-JAX reference mirroring the PyTorch forward exactly."""
    if class_embedding.ndim == 1:
        class_embedding = class_embedding[None, :]
    hidden_dim = params["wq"].shape[1]
    head_dim = hidden_dim // num_heads
    q = class_embedding @ params["wq"] + params["bq"]
    kk = entity_embeddings @ params["wk"] + params["bk"]
    vv = entity_embeddings @ params["wv"] + params["bv"]
    qh = q.reshape(num_heads, head_dim)
    kh = kk.reshape(-1, num_heads, head_dim)
    vh = vv.reshape(-1, num_heads, head_dim)
    logits = jnp.einsum("hd,nhd->hn", qh, kh) / head_dim ** 0.5
    scores = jax.nn.softmax(logits, axis=-1)
    k = min(top_k, scores.shape[-1])
    topv, topi = jax.lax.top_k(scores, k)
    outs = []
    for h in range(num_heads):
        sel = vh[topi[h], h]
        outs.append(jnp.sum(sel * topv[h][:, None], axis=0))
    concat = jnp.concatenate(outs, axis=-1)
    return concat @ params["wo"] + params["bo"][0]


def init_params(key, input_dim, hidden_dim, output_dim):
    ks = jax.random.split(key, 8)
    def lin(kw, kb, fan_in, fan_out):
        bound = 1.0 / np.sqrt(fan_in)
        w = jax.random.uniform(kw, (fan_in, fan_out), jnp.float32, -bound, bound)
        b = jax.random.uniform(kb, (1, fan_out), jnp.float32, -bound, bound)
        return w, b
    wq, bq = lin(ks[0], ks[1], input_dim, hidden_dim)
    wk, bk = lin(ks[2], ks[3], input_dim, hidden_dim)
    wv, bv = lin(ks[4], ks[5], input_dim, hidden_dim)
    wo, bo = lin(ks[6], ks[7], hidden_dim, output_dim)
    return dict(wq=wq, bq=bq, wk=wk, bk=bk, wv=wv, bv=bv, wo=wo, bo=bo)


if __name__ == "__main__":
    input_dim, hidden_dim, output_dim = 32, 32, 16
    num_attn_heads, top_k = 4, 5
    n_entities, batch = 8, 16

    root = jax.random.PRNGKey(0)
    kp, kc, ke = jax.random.split(root, 3)
    params = init_params(kp, input_dim, hidden_dim, output_dim)
    prepared = prepare_evg_params(params, num_attn_heads)

    class_embeddings = jax.random.normal(kc, (batch, input_dim), jnp.float32)              # (B, D)
    entity_embeddings = jax.random.normal(ke, (batch, n_entities, input_dim), jnp.float32)  # (B, N, D)

    out = multi_head_evg_pallas_batched(class_embeddings, entity_embeddings, prepared,
                                        num_heads=num_attn_heads, top_k=top_k)
    out = jax.block_until_ready(out)

    for b in range(batch):
        ref = multi_head_evg_ref(class_embeddings[b], entity_embeddings[b], params,
                                 num_heads=num_attn_heads, top_k=top_k)
        np.testing.assert_allclose(np.asarray(out[b]), np.asarray(ref),
                                   rtol=1e-4, atol=1e-5)
    print("KERNEL_OK")
</pallas_src>

<mosaic_0001>
module attributes {stable_mosaic.version = 11 : i64} {
  func.func @evg_kernel(%arg0: i32, %arg1: memref<8x32xf32, #tpu.memory_space<vmem>>, %arg2: memref<8x8x32xf32, #tpu.memory_space<vmem>>, %arg3: memref<32x32xf32, #tpu.memory_space<vmem>>, %arg4: memref<1x32xf32, #tpu.memory_space<vmem>>, %arg5: memref<32x64xf32, #tpu.memory_space<vmem>>, %arg6: memref<1x64xf32, #tpu.memory_space<vmem>>, %arg7: memref<4x32xf32, #tpu.memory_space<vmem>>, %arg8: memref<32x16xf32, #tpu.memory_space<vmem>>, %arg9: memref<1x16xf32, #tpu.memory_space<vmem>>, %arg10: memref<8x16xf32, #tpu.memory_space<vmem>>) attributes {dimension_semantics = [#tpu.dimension_semantics<parallel>], iteration_bounds = array<i64: 2>, scalar_prefetch = 0 : i64, scratch_operands = 0 : i64, tpu.core_type = #tpu.core_type<tc>, window_params = [{transform_indices = @transform_0, window_bounds = array<i64: 8, 32>}, {transform_indices = @transform_1, window_bounds = array<i64: 8, 8, 32>}, {pipeline_mode = #tpu.pipeline_mode<synchronous>, transform_indices = @transform_2, window_bounds = array<i64: 32, 32>}, {pipeline_mode = #tpu.pipeline_mode<synchronous>, transform_indices = @transform_3, window_bounds = array<i64: 1, 32>}, {pipeline_mode = #tpu.pipeline_mode<synchronous>, transform_indices = @transform_4, window_bounds = array<i64: 32, 64>}, {pipeline_mode = #tpu.pipeline_mode<synchronous>, transform_indices = @transform_5, window_bounds = array<i64: 1, 64>}, {pipeline_mode = #tpu.pipeline_mode<synchronous>, transform_indices = @transform_6, window_bounds = array<i64: 4, 32>}, {pipeline_mode = #tpu.pipeline_mode<synchronous>, transform_indices = @transform_7, window_bounds = array<i64: 32, 16>}, {pipeline_mode = #tpu.pipeline_mode<synchronous>, transform_indices = @transform_8, window_bounds = array<i64: 1, 16>}, {transform_indices = @transform_9, window_bounds = array<i64: 8, 16>}]} {
    %c0 = arith.constant 0 : index
    %c0_0 = arith.constant 0 : index
    %0 = vector.load %arg1[%c0, %c0_0] : memref<8x32xf32, #tpu.memory_space<vmem>>, vector<8x32xf32>
    %c0_1 = arith.constant 0 : index
    %c0_2 = arith.constant 0 : index
    %c0_3 = arith.constant 0 : index
    %1 = vector.load %arg2[%c0_1, %c0_2, %c0_3] : memref<8x8x32xf32, #tpu.memory_space<vmem>>, vector<8x8x32xf32>
    %2 = vector.shape_cast %1 : vector<8x8x32xf32> to vector<64x32xf32>
    %c0_4 = arith.constant 0 : index
    %c0_5 = arith.constant 0 : index
    %3 = vector.load %arg3[%c0_4, %c0_5] : memref<32x32xf32, #tpu.memory_space<vmem>>, vector<32x32xf32>
    %cst = arith.constant dense<0.000000e+00> : vector<8x32xf32>
    %4 = tpu.matmul %0, %3, %cst {dimension_numbers = #tpu.dot_dimension_numbers<[1], [0], [0], [1], [0, 0, 1, 1], [], []>} : vector<8x32xf32>, vector<32x32xf32>, vector<8x32xf32> -> vector<8x32xf32>
    %c0_6 = arith.constant 0 : index
    %c0_7 = arith.constant 0 : index
    %5 = vector.load %arg4[%c0_6, %c0_7] : memref<1x32xf32, #tpu.memory_space<vmem>>, vector<1x32xf32>
    %6 = vector.broadcast %5 : vector<1x32xf32> to vector<8x32xf32>
    %7 = arith.addf %4, %6 : vector<8x32xf32>
    %c0_8 = arith.constant 0 : index
    %c0_9 = arith.constant 0 : index
    %8 = vector.load %arg5[%c0_8, %c0_9] : memref<32x64xf32, #tpu.memory_space<vmem>>, vector<32x64xf32>
    %cst_10 = arith.constant dense<0.000000e+00> : vector<64x64xf32>
    %9 = tpu.matmul %2, %8, %cst_10 {dimension_numbers = #tpu.dot_dimension_numbers<[1], [0], [0], [1], [0, 0, 1, 1], [], []>} : vector<64x32xf32>, vector<32x64xf32>, vector<64x64xf32> -> vector<64x64xf32>
    %c0_11 = arith.constant 0 : index
    %c0_12 = arith.constant 0 : index
    %10 = vector.load %arg6[%c0_11, %c0_12] : memref<1x64xf32, #tpu.memory_space<vmem>>, vector<1x64xf32>
    %11 = vector.broadcast %10 : vector<1x64xf32> to vector<64x64xf32>
    %12 = arith.addf %9, %11 : vector<64x64xf32>
    %13 = vector.shape_cast %12 : vector<64x64xf32> to vector<8x8x64xf32>
    %14 = vector.extract_strided_slice %13 {offsets = [0, 0, 0], sizes = [8, 8, 32], strides = [1, 1, 1]} : vector<8x8x64xf32> to vector<8x8x32xf32>
    %15 = vector.extract_strided_slice %13 {offsets = [0, 0, 32], sizes = [8, 8, 32], strides = [1, 1, 1]} : vector<8x8x64xf32> to vector<8x8x32xf32>
    %c0_13 = arith.constant 0 : index
    %c0_14 = arith.constant 0 : index
    %16 = vector.load %arg7[%c0_13, %c0_14] : memref<4x32xf32, #tpu.memory_space<vmem>>, vector<4x32xf32>
    %17 = vector.shape_cast %7 : vector<8x32xf32> to vector<8x1x32xf32>
    %18 = vector.shape_cast %16 : vector<4x32xf32> to vector<1x4x32xf32>
    %19 = vector.broadcast %17 : vector<8x1x32xf32> to vector<8x4x32xf32>
    %20 = vector.broadcast %18 : vector<1x4x32xf32> to vector<8x4x32xf32>
    %21 = arith.mulf %19, %20 : vector<8x4x32xf32>
    "tpu.trace_start"() <{level = 10 : i32, message = "bhd,bnd->bhn"}> : () -> ()
    %cst_15 = arith.constant dense<0.000000e+00> : vector<8x4x8xf32>
    %22 = tpu.matmul %21, %14, %cst_15 {dimension_numbers = #tpu.dot_dimension_numbers<[2], [2], [1], [1], [0, 0, 0, 1, 1, 1], [0], [0]>} : vector<8x4x32xf32>, vector<8x8x32xf32>, vector<8x4x8xf32> -> vector<8x4x8xf32>
    "tpu.trace_stop"() : () -> ()
    %cst_16 = arith.constant dense<0xFF800000> : vector<8x4xf32>
    %23 = vector.multi_reduction <maximumf>, %22, %cst_16 [2] : vector<8x4x8xf32> to vector<8x4xf32>
    %24 = vector.shape_cast %23 : vector<8x4xf32> to vector<8x4x1xf32>
    %25 = vector.broadcast %24 : vector<8x4x1xf32> to vector<8x4x8xf32>
    %26 = arith.subf %22, %25 : vector<8x4x8xf32>
    %27 = math.exp %26 : vector<8x4x8xf32>
    %cst_17 = arith.constant dense<0.000000e+00> : vector<8x4xf32>
    %28 = vector.multi_reduction <add>, %27, %cst_17 [2] : vector<8x4x8xf32> to vector<8x4xf32>
    %29 = vector.shape_cast %28 : vector<8x4xf32> to vector<8x4x1xf32>
    %30 = tpu.reciprocal %29 : vector<8x4x1xf32> -> vector<8x4x1xf32>
    %31 = vector.broadcast %30 : vector<8x4x1xf32> to vector<8x4x8xf32>
    %32 = arith.mulf %27, %31 : vector<8x4x8xf32>
    %33 = tpu.iota {dimensions = array<i32: 2>} : vector<8x4x8xi32>
    %cst_18 = arith.constant 0.000000e+00 : f32
    %34 = vector.broadcast %cst_18 : f32 to vector<8x4x8xf32>
    %c0_i32 = arith.constant 0 : i32
    %cst_19 = arith.constant dense<0xFF800000> : vector<8x4xf32>
    %35 = vector.multi_reduction <maximumf>, %32, %cst_19 [2] : vector<8x4x8xf32> to vector<8x4xf32>
    %36 = vector.shape_cast %35 : vector<8x4xf32> to vector<8x4x1xf32>
    %37 = vector.broadcast %36 : vector<8x4x1xf32> to vector<8x4x8xf32>
    %38 = arith.cmpf oeq, %32, %37 : vector<8x4x8xf32>
    %c8_i32 = arith.constant 8 : i32
    %39 = vector.broadcast %c8_i32 : i32 to vector<8x4x8xi32>
    %40 = arith.select %38, %33, %39 : vector<8x4x8xi1>, vector<8x4x8xi32>
    %cst_20 = arith.constant dense<2147483647> : vector<8x4xi32>
    %41 = vector.multi_reduction <minsi>, %40, %cst_20 [2] : vector<8x4x8xi32> to vector<8x4xi32>
    %42 = vector.shape_cast %41 : vector<8x4xi32> to vector<8x4x1xi32>
    %43 = vector.broadcast %42 : vector<8x4x1xi32> to vector<8x4x8xi32>
    %44 = arith.cmpi eq, %33, %43 : vector<8x4x8xi32>
    %cst_21 = arith.constant 0xFF800000 : f32
    %45 = vector.broadcast %cst_21 : f32 to vector<8x4x8xf32>
    %46 = arith.select %44, %45, %32 : vector<8x4x8xi1>, vector<8x4x8xf32>
    %cst_22 = arith.constant 1.000000e+00 : f32
    %47 = vector.broadcast %cst_22 : f32 to vector<8x4x8xf32>
    %48 = arith.select %44, %47, %34 : vector<8x4x8xi1>, vector<8x4x8xf32>
    %c1_i32 = arith.constant 1 : i32
    %cst_23 = arith.constant dense<0xFF800000> : vector<8x4xf32>
    %49 = vector.multi_reduction <maximumf>, %46, %cst_23 [2] : vector<8x4x8xf32> to vector<8x4xf32>
    %50 = vector.shape_cast %49 : vector<8x4xf32> to vector<8x4x1xf32>
    %51 = vector.broadcast %50 : vector<8x4x1xf32> to vector<8x4x8xf32>
    %52 = arith.cmpf oeq, %46, %51 : vector<8x4x8xf32>
    %c8_i32_24 = arith.constant 8 : i32
    %53 = vector.broadcast %c8_i32_24 : i32 to vector<8x4x8xi32>
    %54 = arith.select %52, %33, %53 : vector<8x4x8xi1>, vector<8x4x8xi32>
    %cst_25 = arith.constant dense<2147483647> : vector<8x4xi32>
    %55 = vector.multi_reduction <minsi>, %54, %cst_25 [2] : vector<8x4x8xi32> to vector<8x4xi32>
    %56 = vector.shape_cast %55 : vector<8x4xi32> to vector<8x4x1xi32>
    %57 = vector.broadcast %56 : vector<8x4x1xi32> to vector<8x4x8xi32>
    %58 = arith.cmpi eq, %33, %57 : vector<8x4x8xi32>
    %cst_26 = arith.constant 0xFF800000 : f32
    %59 = vector.broadcast %cst_26 : f32 to vector<8x4x8xf32>
    %60 = arith.select %58, %59, %46 : vector<8x4x8xi1>, vector<8x4x8xf32>
    %cst_27 = arith.constant 1.000000e+00 : f32
    %61 = vector.broadcast %cst_27 : f32 to vector<8x4x8xf32>
    %62 = arith.select %58, %61, %48 : vector<8x4x8xi1>, vector<8x4x8xf32>
    %c2_i32 = arith.constant 2 : i32
    %cst_28 = arith.constant dense<0xFF800000> : vector<8x4xf32>
    %63 = vector.multi_reduction <maximumf>, %60, %cst_28 [2] : vector<8x4x8xf32> to vector<8x4xf32>
    %64 = vector.shape_cast %63 : vector<8x4xf32> to vector<8x4x1xf32>
    %65 = vector.broadcast %64 : vector<8x4x1xf32> to vector<8x4x8xf32>
    %66 = arith.cmpf oeq, %60, %65 : vector<8x4x8xf32>
    %c8_i32_29 = arith.constant 8 : i32
    %67 = vector.broadcast %c8_i32_29 : i32 to vector<8x4x8xi32>
    %68 = arith.select %66, %33, %67 : vector<8x4x8xi1>, vector<8x4x8xi32>
    %cst_30 = arith.constant dense<2147483647> : vector<8x4xi32>
    %69 = vector.multi_reduction <minsi>, %68, %cst_30 [2] : vector<8x4x8xi32> to vector<8x4xi32>
    %70 = vector.shape_cast %69 : vector<8x4xi32> to vector<8x4x1xi32>
    %71 = vector.broadcast %70 : vector<8x4x1xi32> to vector<8x4x8xi32>
    %72 = arith.cmpi eq, %33, %71 : vector<8x4x8xi32>
    %cst_31 = arith.constant 0xFF800000 : f32
    %73 = vector.broadcast %cst_31 : f32 to vector<8x4x8xf32>
    %74 = arith.select %72, %73, %60 : vector<8x4x8xi1>, vector<8x4x8xf32>
    %cst_32 = arith.constant 1.000000e+00 : f32
    %75 = vector.broadcast %cst_32 : f32 to vector<8x4x8xf32>
    %76 = arith.select %72, %75, %62 : vector<8x4x8xi1>, vector<8x4x8xf32>
    %c3_i32 = arith.constant 3 : i32
    %cst_33 = arith.constant dense<0xFF800000> : vector<8x4xf32>
    %77 = vector.multi_reduction <maximumf>, %74, %cst_33 [2] : vector<8x4x8xf32> to vector<8x4xf32>
    %78 = vector.shape_cast %77 : vector<8x4xf32> to vector<8x4x1xf32>
    %79 = vector.broadcast %78 : vector<8x4x1xf32> to vector<8x4x8xf32>
    %80 = arith.cmpf oeq, %74, %79 : vector<8x4x8xf32>
    %c8_i32_34 = arith.constant 8 : i32
    %81 = vector.broadcast %c8_i32_34 : i32 to vector<8x4x8xi32>
    %82 = arith.select %80, %33, %81 : vector<8x4x8xi1>, vector<8x4x8xi32>
    %cst_35 = arith.constant dense<2147483647> : vector<8x4xi32>
    %83 = vector.multi_reduction <minsi>, %82, %cst_35 [2] : vector<8x4x8xi32> to vector<8x4xi32>
    %84 = vector.shape_cast %83 : vector<8x4xi32> to vector<8x4x1xi32>
    %85 = vector.broadcast %84 : vector<8x4x1xi32> to vector<8x4x8xi32>
    %86 = arith.cmpi eq, %33, %85 : vector<8x4x8xi32>
    %cst_36 = arith.constant 0xFF800000 : f32
    %87 = vector.broadcast %cst_36 : f32 to vector<8x4x8xf32>
    %88 = arith.select %86, %87, %74 : vector<8x4x8xi1>, vector<8x4x8xf32>
    %cst_37 = arith.constant 1.000000e+00 : f32
    %89 = vector.broadcast %cst_37 : f32 to vector<8x4x8xf32>
    %90 = arith.select %86, %89, %76 : vector<8x4x8xi1>, vector<8x4x8xf32>
    %c4_i32 = arith.constant 4 : i32
    %cst_38 = arith.constant dense<0xFF800000> : vector<8x4xf32>
    %91 = vector.multi_reduction <maximumf>, %88, %cst_38 [2] : vector<8x4x8xf32> to vector<8x4xf32>
    %92 = vector.shape_cast %91 : vector<8x4xf32> to vector<8x4x1xf32>
    %93 = vector.broadcast %92 : vector<8x4x1xf32> to vector<8x4x8xf32>
    %94 = arith.cmpf oeq, %88, %93 : vector<8x4x8xf32>
    %c8_i32_39 = arith.constant 8 : i32
    %95 = vector.broadcast %c8_i32_39 : i32 to vector<8x4x8xi32>
    %96 = arith.select %94, %33, %95 : vector<8x4x8xi1>, vector<8x4x8xi32>
    %cst_40 = arith.constant dense<2147483647> : vector<8x4xi32>
    %97 = vector.multi_reduction <minsi>, %96, %cst_40 [2] : vector<8x4x8xi32> to vector<8x4xi32>
    %98 = vector.shape_cast %97 : vector<8x4xi32> to vector<8x4x1xi32>
    %99 = vector.broadcast %98 : vector<8x4x1xi32> to vector<8x4x8xi32>
    %100 = arith.cmpi eq, %33, %99 : vector<8x4x8xi32>
    %cst_41 = arith.constant 0xFF800000 : f32
    %101 = vector.broadcast %cst_41 : f32 to vector<8x4x8xf32>
    %102 = arith.select %100, %101, %88 : vector<8x4x8xi1>, vector<8x4x8xf32>
    %cst_42 = arith.constant 1.000000e+00 : f32
    %103 = vector.broadcast %cst_42 : f32 to vector<8x4x8xf32>
    %104 = arith.select %100, %103, %90 : vector<8x4x8xi1>, vector<8x4x8xf32>
    %105 = arith.mulf %104, %32 : vector<8x4x8xf32>
    "tpu.trace_start"() <{level = 10 : i32, message = "bhn,bnd->bhd"}> : () -> ()
    %cst_43 = arith.constant dense<0.000000e+00> : vector<8x4x32xf32>
    %106 = tpu.matmul %105, %15, %cst_43 {dimension_numbers = #tpu.dot_dimension_numbers<[2], [1], [1], [2], [0, 0, 0, 1, 1, 2], [0], [0]>} : vector<8x4x8xf32>, vector<8x8x32xf32>, vector<8x4x32xf32> -> vector<8x4x32xf32>
    "tpu.trace_stop"() : () -> ()
    %107 = vector.shape_cast %16 : vector<4x32xf32> to vector<1x4x32xf32>
    %108 = vector.broadcast %107 : vector<1x4x32xf32> to vector<8x4x32xf32>
    %109 = arith.mulf %108, %106 : vector<8x4x32xf32>
    %cst_44 = arith.constant dense<0.000000e+00> : vector<8x32xf32>
    %110 = vector.multi_reduction <add>, %109, %cst_44 [1] : vector<8x4x32xf32> to vector<8x32xf32>
    %c0_45 = arith.constant 0 : index
    %c0_46 = arith.constant 0 : index
    %111 = vector.load %arg8[%c0_45, %c0_46] : memref<32x16xf32, #tpu.memory_space<vmem>>, vector<32x16xf32>
    %cst_47 = arith.constant dense<0.000000e+00> : vector<8x16xf32>
    %112 = tpu.matmul %110, %111, %cst_47 {dimension_numbers = #tpu.dot_dimension_numbers<[1], [0], [0], [1], [0, 0, 1, 1], [], []>} : vector<8x32xf32>, vector<32x16xf32>, vector<8x16xf32> -> vector<8x16xf32>
    %c0_48 = arith.constant 0 : index
    %c0_49 = arith.constant 0 : index
    %113 = vector.load %arg9[%c0_48, %c0_49] : memref<1x16xf32, #tpu.memory_space<vmem>>, vector<1x16xf32>
    %114 = vector.broadcast %113 : vector<1x16xf32> to vector<8x16xf32>
    %115 = arith.addf %112, %114 : vector<8x16xf32>
    %c0_50 = arith.constant 0 : index
    %c0_51 = arith.constant 0 : index
    %116 = vector.load %arg10[%c0_50, %c0_51] : memref<8x16xf32, #tpu.memory_space<vmem>>, vector<8x16xf32>
    tpu.vector_store %arg10[%c0_50, %c0_51], %115 {strides = array<i32>} : memref<8x16xf32, #tpu.memory_space<vmem>>, vector<8x16xf32>,
    return
  }
  func.func @transform_0(%arg0: i32) -> (i32, i32) {
    %c0_i32 = arith.constant 0 : i32
    %c0_i32_0 = arith.constant 0 : i32
    return %arg0, %c0_i32 : i32, i32
  }
  func.func @transform_1(%arg0: i32) -> (i32, i32, i32) {
    %c0_i32 = arith.constant 0 : i32
    %c0_i32_0 = arith.constant 0 : i32
    %c0_i32_1 = arith.constant 0 : i32
    return %arg0, %c0_i32, %c0_i32_0 : i32, i32, i32
  }
  func.func @transform_2(%arg0: i32) -> (i32, i32) {
    %c0_i32 = arith.constant 0 : i32
    %c0_i32_0 = arith.constant 0 : i32
    %c0_i32_1 = arith.constant 0 : i32
    return %c0_i32, %c0_i32_0 : i32, i32
  }
  func.func @transform_3(%arg0: i32) -> (i32, i32) {
    %c0_i32 = arith.constant 0 : i32
    %c0_i32_0 = arith.constant 0 : i32
    %c0_i32_1 = arith.constant 0 : i32
    return %c0_i32, %c0_i32_0 : i32, i32
  }
  func.func @transform_4(%arg0: i32) -> (i32, i32) {
    %c0_i32 = arith.constant 0 : i32
    %c0_i32_0 = arith.constant 0 : i32
    %c0_i32_1 = arith.constant 0 : i32
    return %c0_i32, %c0_i32_0 : i32, i32
  }
  func.func @transform_5(%arg0: i32) -> (i32, i32) {
    %c0_i32 = arith.constant 0 : i32
    %c0_i32_0 = arith.constant 0 : i32
    %c0_i32_1 = arith.constant 0 : i32
    return %c0_i32, %c0_i32_0 : i32, i32
  }
  func.func @transform_6(%arg0: i32) -> (i32, i32) {
    %c0_i32 = arith.constant 0 : i32
    %c0_i32_0 = arith.constant 0 : i32
    %c0_i32_1 = arith.constant 0 : i32
    return %c0_i32, %c0_i32_0 : i32, i32
  }
  func.func @transform_7(%arg0: i32) -> (i32, i32) {
    %c0_i32 = arith.constant 0 : i32
    %c0_i32_0 = arith.constant 0 : i32
    %c0_i32_1 = arith.constant 0 : i32
    return %c0_i32, %c0_i32_0 : i32, i32
  }
  func.func @transform_8(%arg0: i32) -> (i32, i32) {
    %c0_i32 = arith.constant 0 : i32
    %c0_i32_0 = arith.constant 0 : i32
    %c0_i32_1 = arith.constant 0 : i32
    return %c0_i32, %c0_i32_0 : i32, i32
  }
  func.func @transform_9(%arg0: i32) -> (i32, i32) {
    %c0_i32 = arith.constant 0 : i32
    %c0_i32_0 = arith.constant 0 : i32
    return %arg0, %c0_i32 : i32, i32
  }
}

</mosaic_0001>

<bundles_post_ra>
// kernel: tpu_custom_call.1
= control target key start
LH: loop header
LB: loop body
LE: loop exit
PB: predicated region body
PF: predicated region fallthrough
CT: control target
= control target key end

     0   :  { %14 = vsyncpa [#allocation3], 0  ;;  %s4763_s0 = inlined_call_operand.vmem [shape: f32[16,32], index: 0, kind: input, shape index: {}]   ;;  %s4764_s1 = inlined_call_operand.hbm [shape: f32[16,8,32], index: 1, kind: input, shape index: {}]   ;;  %s4765_s2 = inlined_call_operand.vmem [shape: f32[32,32], index: 2, kind: input, shape index: {}]   ;;  %s4766_s3 = inlined_call_operand.vmem [shape: f32[1,32], index: 3, kind: input, shape index: {}]   ;;  %s4767_s4 = inlined_call_operand.hbm [shape: f32[32,64], index: 4, kind: input, shape index: {}]   ;;  %s4768_s5 = inlined_call_operand.vmem [shape: f32[1,64], index: 5, kind: input, shape index: {}]   ;;  %s4769_s6 = inlined_call_operand.vmem [shape: f32[4,32], index: 6, kind: input, shape index: {}]   ;;  %s4770_s7 = inlined_call_operand.vmem [shape: f32[32,16], index: 7, kind: input, shape index: {}]   ;;  %s4771_s8 = inlined_call_operand.vmem [shape: f32[1,16], index: 8, kind: input, shape index: {}]   ;;  %s4772_s9 = inlined_call_operand.hbm [shape: f32[16,16], index: 9, kind: output, shape index: {}]  }
   0x1   :  { %16 = vsyncpa [#allocation3 + $0x1], 0 }
   0x2   :  { %17 = vsyncpa [#allocation6], 0 }
   0x3   :  { %18 = vsyncpa [#allocation4], 0 }
   0x4   :  { %20 = vsyncpa [#allocation4 + $0x1], 0  ;;  %s3760_s30 = smov 0   ;;  %s3762_s10 = smov 0  }
   0x5   :  { %s3764_s11 = smov 0   ;;  %s3766_s12 = smov 0  }
   0x6 LB: > { %s3781_s13 = sadd.s32 4294967295, %s3698_s12   ;;  %s3223_s14 = sadd.s32 4294967294, %s3698_s12   ;;  %s3698_s12 = sphi %s3766_s12, %s4806_s12   ;;  %s3694_s11 = sphi %s3764_s11, %s4809_s11   ;;  %s3690_s10 = sphi %s3762_s10, %s4808_s10   ;;  %s3686_s30 = sphi %s3760_s30, %s4807_s30  }
   0x7   : > { %p72_p0 = scmp.ne.s32.totalorder %s3690_s10, %s3686_s30  ;;  %p4773_p1 = scmp.eq.s32.totalorder %s3781_s13, 0 }
   0x8   : > { %p249_p3 = scmp.eq.s32.totalorder %s3223_s14, 1  ;;  %p3224_p5 = scmp.ge.s32.totalorder %s3698_s12, 1 }
   0x9   : > { %p3790_p4 = por %p4773_p1, %p72_p0  ;;  %p256_p7 = scmp.lt.s32.totalorder %s3698_s12, 3 }
   0xa   : > { %p3795_p6 = por %p249_p3, %p72_p0  ;;  %s3700_s18 = smov [#allocation5]  }
   0xb   : > { %s4785_s15 = scalar_select %p3790_p4, 1, 0 }
   0xc   : > { %s4786_s16 = scalar_select %p3795_p6, 1, 0 }
   0xd   : > { %p3800_p8 = pnand %p3224_p5, %p256_p7  ;;  %s274_s19 = sshll.u32 %s3700_s18, 4  ;;  %s3804_s19 = int_to_ptr.vmem [resolvable:$true] %s274_s19 }
   0xe   : > { %4787 = sst [smem:[#allocation11_spill]] %s4786_s16  ;;  %s3816_s21 = sadd.s32 1, %s3698_s12  }
   0xf   : > { %s4788_s17 = scalar_select %p3800_p8, 1, 0 }
  0x10   : > { %p3481_p9 = pneg %p3800_p8  ;;  %4790 = sst [smem:[#allocation12_spill]] %s3816_s21 }
  0x11   : > { %s59_s22 = sadd.s32 1, %s3694_s11  ;;  %s56_s23 = ssub.s32 %s3698_s12, %s3816_s21 }
  0x12   : > { %p3811_p11 = pnand %p3481_p9, %p4773_p1  ;;  %s3570_s26 = scalar_lea.hbm %s4767_s4, 512 }
  0x13   : > { %p3571_p12 = scmp.ne.s32.totalorder %s4767_s4, %s3570_s26  ;;  %p3577_p5 = scmp.lt.u32.totalorder %s3570_s26, %s4767_s4 }
  0x14   : > { %p3572_p13 = pneg %p3811_p11 }
  0x16   : > { %p3573_p0 = pnand %p3572_p13, %p3571_p12 }
  0x18   : > { %p3574_p3 = pneg %p3573_p0 }
  0x1a   : > { %p3579_p7 = pnand %p3577_p5, %p3574_p3 }
  0x1c   : > { %3582 = shalt.err (!%p3579_p7)
}
  0x1d   : > { %s3583_s18 = scalar_lea.vmem %s3804_s19, 512  ;;  %p3591_p2 = scmp.lt.s32.totalorder %s3804_s19, %s3804_s19 }
  0x1e   : > { %p3584_p9 = scmp.ne.s32.totalorder %s3804_s19, %s3583_s18  ;;  %p3592_p6 = scmp.lt.s32.totalorder %s3583_s18, %s3583_s18 }
  0x20   : > { %p3586_p10 = pnand %p3584_p9, %p3572_p13  ;;  %p3593_p4 = por %p3592_p6, %p3591_p2 }
  0x22   : > { %p3587_p1 = pneg %p3586_p10 }
  0x24   : > { %p3594_p8 = pnand %p3593_p4, %p3587_p1 }
  0x26   : > { %3597 = shalt.err (!%p3594_p8)
}
  0x27   : > { %s4779_s24 = smov 128   ;;  %s3702_s25 = smov 8  }
  0x28   : > { %3484 = dma.hbm_to_vmem [thread:$0]  (!%p3811_p11), %s4767_s4, 512, %s3804_s19, [#allocation6], %s4779_s24, %s4779_s24, %s3702_s25  }
  0x29   : > { %p57_p1 = scmp.eq.s32.totalorder %s56_s23, 0  ;;  %p66_p2 = scmp.ne.s32.totalorder %s3694_s11, %s3690_s10 }
  0x2a   : > { %p67_p4 = scmp.eq.s32.totalorder %s3698_s12, 0  ;;  %p3494_p6 = scmp.lt.s32.totalorder %s3698_s12, 2 }
  0x2b   : > { %s3850_s28 = scalar_select %p57_p1, %s3694_s11, %s59_s22  }
  0x2c   : > { %p68_p8 = por %p67_p4, %p66_p2  ;;  %p4791_p10 = scmp.eq.s32.totalorder %s3781_s13, 1 }
  0x2d   : > { %s307_s20 = sand.u32 1, %s3694_s11   ;;  %s3276_s14 = sshll.u32 %s3698_s12, 10 }
  0x2e   : > { %p3854_p12 = por %p4791_p10, %p66_p2  ;;  %s3227_s18 = sshll.u32 %s307_s20, 6 }
  0x2f   : > { %s3863_s26 = scalar_lea.hbm %s4764_s1, %s3276_s14  ;;  %s311_s19 = scalar_lea.vmem [#allocation2], %s3227_s18 }
  0x30   : > { %s318_s22 = sshll.u32 %s311_s19, 4  ;;  %p3865_p11 = pnand %p3494_p6, %p68_p8  ;;  %s3869_s22 = int_to_ptr.vmem [resolvable:$true] %s318_s22 }
  0x31   : > { %s3871_s27 = scalar_lea.sflag [#allocation3], %s307_s20  ;;  %s3598_s24 = scalar_lea.hbm %s3863_s26, 1024 }
  0x32   : > { %p3599_p13 = scmp.ne.s32.totalorder %s3863_s26, %s3598_s24  ;;  %p3600_p0 = pneg %p3865_p11 }
  0x33   : > { %s3603_s14 = scalar_lea.hbm %s4764_s1, 2048  ;;  %p3604_p7 = scmp.lt.u32.totalorder %s3863_s26, %s4764_s1 }
  0x34   : > { %p3601_p3 = pnand %p3600_p0, %p3599_p13  ;;  %p3605_p9 = scmp.lt.u32.totalorder %s3603_s14, %s3598_s24 }
  0x35   : > { %p3607_p2 = scmp.lt.u32.totalorder %s3598_s24, %s3863_s26 }
  0x36   : > { %p3602_p5 = pneg %p3601_p3  ;;  %p3606_p1 = por %p3605_p9, %p3604_p7 }
  0x38   : > { %p3608_p4 = por %p3607_p2, %p3606_p1 }
  0x3a   : > { %p3609_p6 = pnand %p3608_p4, %p3602_p5 }
  0x3c   : > { %3612 = shalt.err (!%p3609_p6)
}
  0x3d   : > { %s3613_s20 = scalar_lea.vmem %s3869_s22, 1024  ;;  %s3703_s16 = smov [#allocation2]  }
  0x3e   : > { %p3614_p8 = scmp.ne.s32.totalorder %s3869_s22, %s3613_s20  ;;  %s3618_s21 = sshll.u32 %s3703_s16, 4  ;;  %s3619_s21 = int_to_ptr.vmem [resolvable:$false] %s3618_s21 }
  0x3f   : > { %s3620_s18 = scalar_lea.vmem %s3619_s21, 2048  ;;  %p3621_p3 = scmp.lt.s32.totalorder %s3869_s22, %s3619_s21 }
  0x40   : > { %p3616_p10 = pnand %p3614_p8, %p3600_p0  ;;  %p3622_p7 = scmp.lt.s32.totalorder %s3620_s18, %s3613_s20 }
  0x42   : > { %p3617_p13 = pneg %p3616_p10  ;;  %p3623_p9 = por %p3622_p7, %p3621_p3 }
  0x44   : > { %p3624_p1 = pnand %p3623_p9, %p3617_p13 }
  0x46   : > { %3627 = shalt.err (!%p3624_p1)
}
  0x47   : > { %s4794_s24 = smov 128   ;;  %p4795_p0 = scmp.ne.s32.totalorder %s4788_s17, 0 }
  0x48   : > { %3488 = dma.hbm_to_vmem [thread:$0]  (!%p3865_p11), %s3863_s26, 1024, %s3869_s22, %s3871_s27, %s4794_s24, %s4794_s24, %s3702_s25  }
  0x49   : > { %330 = sbr.rel (%p4795_p0) target bundleno = 3586 (0xe02), region = 56 }
  0x50   : > { %s3905_s14 = sand.u32 1, %s3690_s10   ;;  %p4796_p5 = scmp.ne.s32.totalorder %s4785_s15, 0 }
  0x51   : > { %s3231_s19 = sshll.u32 %s3905_s14, 6  ;;  %s333_s20 = scalar_lea.sflag [#allocation3], %s3905_s14 }
  0x52   : > { %s3909_s16 = scalar_lea.vmem [#allocation2], %s3231_s19 }
  0x53   : > { %3673 = dma.done.wait (%p4796_p5), %s333_s20, 1024  }
  0x54   : > { %3675 = vsyncadd (%p4796_p5), %s333_s20, 4294966272  ;;  %p4797_p11 = scmp.eq.s32.totalorder %s3781_s13, 0 }
  0x56   : > { %3677 = dma.done.wait (%p4797_p11), [#allocation6], 512   ;;  %p4798_p2 = pmov %p4797_p11 }
  0x57   : > { %p379_p4 = scmp.lt.s32.totalorder %s3781_s13, 1  ;;  %v4780_v0 = vmov 0.0|0.0   ;;  %vm3705_vm0 = vmmov 0   ;;  %v4782_v1 = vmov 0.0   ;;  %v393_v2 = vld [vmem:[%s4765_s2] sm:$0xff]  ;;  %v394_v3 = vld [vmem:[%s4765_s2 + $0x8] sm:$0xff]  ;;  %v624_v25 = vlaneseq }
  0x58   : > { %3679 = vsyncadd (%p4798_p2), [#allocation6], 4294966784  ;;  %3453 = vmatprep.subr.bf16.mxu0 %v4780_v0  ;;  %3339 = vmatprep.mubr.msk.f32.mxu0 %vm3705_vm0, %v4782_v1  ;;  %v478_v4 = vld [vmem:[#allocation5] sm:$0xff]  ;;  %v3454_v5 = vpack.c.bf16 %v394_v3, %v393_v2  ;;  %v479_v6 = vld [vmem:[#allocation5 + $0x8] sm:$0xff]  ;;  %vm404_vm1 = vcmask 261120   ;;  %vm1325_vm2 = vcmask 60416  }
  0x59   : > { %s380_s17 = scalar_select %p379_p4, %s3781_s13, 1  ;;  %v395_v7 = vld [vmem:[%s4765_s2 + $0x10] sm:$0xff]  ;;  %v396_v8 = vld [vmem:[%s4765_s2 + $0x18] sm:$0xff]  ;;  %v3459_v9 = vpack.c.bf16 %v479_v6, %v478_v4  ;;  %v385_v14 = vld [vmem:[%s3909_s16] sm:$0xff]  ;;  %v3707_v23 = vmov 1966171168  }
  0x5a   : > { %v480_v10 = vld [vmem:[#allocation5 + $0x10] sm:$0xff]  ;;  %v481_v11 = vld [vmem:[#allocation5 + $0x18] sm:$0xff]  ;;  %3455 = vmatpush3.bf16.msra.mxu0 %v3454_v5  ;;  %v3457_v12 = vpack.c.bf16 %v396_v8, %v395_v7  ;;  %3350 = vmatprep.mubr.msk.f32.mxu1 %vm404_vm1, %v385_v14  ;;  %v386_v16 = vld [vmem:[%s3909_s16 + $0x8] sm:$0xff]  ;;  %v622_v24 = vunpack.c.l.s4 %v3707_v23  ;;  %v625_v27 = vshrl.u32 %v624_v25, 7  ;;  %s3708_s27 = smov 96   ;;  %s3233_s22 = sshll.u32 %s3905_s14, 3 }
  0x5b   : > { %s3234_s24 = sshll.u32 %s380_s17, 3  ;;  %v3463_v13 = vpack.c.bf16 %v481_v11, %v480_v10  ;;  %3460 = vmatprep.subr.bf16.mxu1 %v3459_v9  ;;  %3456 = vmatprep.subr.bf16.mxu0 %v4780_v0  ;;  %v387_v17 = vld [vmem:[%s3909_s16 + $0x10] sm:$0xff]  ;;  %v388_v18 = vld [vmem:[%s3909_s16 + $0x18] sm:$0xff]  ;;  %v389_v19 = vld [vmem:[%s3909_s16 + $0x20] sm:$0xff]  ;;  %s3273_s21 = sshll.u32 %s3781_s13, 7 }
  0x5c   : > { %s382_s15 = scalar_lea.vmem %s4763_s0, %s3234_s24  ;;  %3462 = vmatpush3.bf16.msra.mxu1 %v3459_v9  ;;  %v390_v20 = vld [vmem:[%s3909_s16 + $0x28] sm:$0xff]  ;;  %v391_v21 = vld [vmem:[%s3909_s16 + $0x30] sm:$0xff]  ;;  %v392_v22 = vld [vmem:[%s3909_s16 + $0x38] sm:$0xff]  ;;  %v623_v26 = vunpack.c.0.s8 %v622_v24  ;;  %v3972_v38 = vsub.s32 0, %v625_v27  ;;  %s378_s18 = scalar_lea.vmem [#allocation7], %s3233_s22 }
  0x5d   : > { %3464 = vmatprep.subr.bf16.mxu1 %v3463_v13  ;;  %v384_v15 = vld [vmem:[%s382_s15] sm:$0xff]  ;;  %s3131_s24 = sshll.u32 %s378_s18, 4  ;;  %s4719_s15 = scalar_lea.hbm %s4772_s9, %s3273_s21  ;;  %s4721_s24 = int_to_ptr.vmem [resolvable:$true] %s3131_s24 }
  0x5e   : > { %3458 = vmatpush3.bf16.msra.mxu0 %v3457_v12  ;;  %v3235_v28 = vld [vmem:[%s4766_s3] ss:$0 sm:$0xff]  ;;  %v626_v29 = vsub.s32 %v623_v26, %v625_v27  ;;  %s3118_s17 = scalar_lea.sflag [#allocation4], %s3905_s14  ;;  %s3628_s25 = scalar_lea.vmem %s4721_s24, 128 }
  0x5f   : > { %3362 = vmatprep.subr.mxu0 %v4782_v1  ;;  %v3970_v32 = vld [vmem:[%s4768_s5] ss:$0 sm:$0xff]  ;;  %p3629_p6 = scmp.ne.s32.totalorder %s4721_s24, %s3628_s25  ;;  %s3709_s13 = smov [#allocation7]  }
  0x60   : > { %3466 = vmatpush3.bf16.msra.mxu1 %v3463_v13  ;;  %v3982_v44 = vld [vmem:[%s4769_s6] sm:$0xf]  ;;  %s3632_s26 = sshll.u32 %s3709_s13, 4  ;;  %s3633_s26 = int_to_ptr.vmem [resolvable:$false] %s3632_s26 }
  0x61   : > { %3340 = vmatmul.mubr.msk.f32.vlgmr.msra.gmra.mrb[0].mxu0 %vm404_vm1, %v384_v15  ;;  %3382 = vmatprep.subr.mxu1 %v4782_v1  ;;  %p3630_p8 = pnand %p3629_p6, %p3854_p12  ;;  %s3634_s16 = scalar_lea.vmem %s3633_s26, 256 }
  0x62   : > { %3364 = vmatprep.mubr.msk.f32.mxu0 %vm3705_vm0, %v4782_v1  ;;  %p3635_p13 = scmp.lt.s32.totalorder %s4721_s24, %s3633_s26  ;;  %p3636_p3 = scmp.lt.s32.totalorder %s3634_s16, %s3628_s25 }
  0x63   : > { %3351 = vmatmul.mubr.msk.f32.vlgmr.msra.gmra.mrb[0].mxu1 %vm404_vm1, %v386_v16  ;;  %p3631_p10 = pneg %p3630_p8 }
  0x64   : > { %3353 = vmatprep.mubr.msk.f32.mxu1 %vm404_vm1, %v387_v17  ;;  %p3637_p7 = por %p3636_p3, %p3635_p13 }
  0x66   : > { %p3638_p9 = pnand %p3637_p7, %p3631_p10 }
  0x67   : > { %3354 = vmatmul.mubr.msk.f32.gmra.mrb[2].mxu1 %vm404_vm1, %v388_v18 }
  0x68   : > { %3356 = vmatprep.mubr.msk.f32.mxu1 %vm404_vm1, %v389_v19 }
  0x6b   : > { %3357 = vmatmul.mubr.msk.f32.gmra.mrb[4].mxu1 %vm404_vm1, %v390_v20 }
  0x6c   : > { %3359 = vmatprep.mubr.msk.f32.mxu1 %vm404_vm1, %v391_v21 }
  0x6f   : > { %3360 = vmatmul.mubr.msk.f32.gmra.mrb[6].mxu1 %vm404_vm1, %v392_v22 }
  0x70   : > { %3384 = vmatprep.mubr.msk.f32.mxu1 %vm3705_vm0, %v4782_v1 }
 0x134   : > { %v474_v30 = vpop.f32.mrb[0].mxu0 }
 0x135   : > { %v475_v31 = vadd.f32 %v3235_v28, %v474_v30  ;;  %v3341_v33 = vpop.f32.mrb[1].mxu0 }
 0x136   : > { %v3352_v34 = vpop.f32.mrb[0].mxu1 }
 0x137   : > { %v620_v35 = vcombine.high %v475_v31, %v475_v31  ;;  %v627_v36 = vrot.slane %v475_v31, %v626_v29  ;;  %v579_v37 = vpop.f32.mrb[1].mxu1  ;;  %v3989_v53 = vadd.f32 %v3352_v34, %v3970_v32 }
 0x138   : > { %v3975_v39 = vadd.f32 %v3970_v32, %v579_v37 }
 0x139   : > { %v634_v40 = vrot.slane %v620_v35, %v626_v29  ;;  %v635_v41 = vcombine.high %v627_v36, %v627_v36  ;;  %v643_v42 = vrot.slane %v627_v36, %v626_v29 }
 0x13a   : > { %v3355_v43 = vpop.f32.mrb[2].mxu1  ;;  %3363 = vmatpush3.xpose.msk.msra.mxu0 %vm404_vm1, %v3975_v39 }
 0x13b   : > { %v657_v45 = vrot.slane %v635_v41, %v626_v29  ;;  %v589_v46 = vpop.f32.mrb[3].mxu1  ;;  %3367 = vmatprep.subr.mxu0 %v4782_v1  ;;  %v650_v47 = vrot.slane %v634_v40, %v626_v29  ;;  %v672_v48 = vrot.slane %v643_v42, %v3972_v38  ;;  %v665_v49 = vcombine.high %v643_v42, %v643_v42 }
 0x13c   : > { %v3994_v57 = vadd.f32 %v3970_v32, %v589_v46  ;;  %v636_v59 = vcombine.high %v634_v40, %v634_v40  ;;  %v4016_v6 = vadd.f32 %v3355_v43, %v3970_v32 }
 0x13d   : > { %v676_v50 = vrot.slane %v657_v45, %v3972_v38  ;;  %v709_v51 = vmul.f32 %v672_v48, %v3982_v44  ;;  %v666_v55 = vcombine.high %v650_v47, %v650_v47  ;;  %v688_v56 = vrot.slane %v650_v47, %v3972_v38 }
 0x13e   : > { %v3358_v52 = vpop.f32.mrb[4].mxu1  ;;  %v667_v60 = vcombine.high %v657_v45, %v657_v45  ;;  %v680_v61 = vrot.slane %v665_v49, %v3972_v38  ;;  %v664_v7 = vrot.slane %v636_v59, %v626_v29 }
 0x13f   : > { %v599_v54 = vpop.f32.mrb[5].mxu1  ;;  %3365 = vmatmul.mubr.msk.f32.vlgmr.msra.gmra.mrb[2].mxu0 %vm404_vm1, %v709_v51  ;;  %v710_v62 = vmul.f32 %v676_v50, %v3982_v44  ;;  %v696_v3 = vrot.slane %v666_v55, %v3972_v38  ;;  %v713_v4 = vmul.f32 %v688_v56, %v3982_v44  ;;  %v4034_v11 = vadd.f32 %v3358_v52, %v3970_v32 }
 0x140   : > { %v3997_v58 = vadd.f32 %v3970_v32, %v599_v54  ;;  %3368 = vmatpush3.xpose.msk.msra.mxu0 %vm404_vm1, %v3989_v53  ;;  %3369 = vmatprep.mubr.msk.f32.mxu0 %vm3705_vm0, %v4782_v1  ;;  %v684_v8 = vrot.slane %v667_v60, %v3972_v38  ;;  %v711_v9 = vmul.f32 %v680_v61, %v3982_v44 }
 0x141   : > { %3372 = vmatprep.subr.mxu0 %v4782_v1  ;;  %v715_v10 = vmul.f32 %v696_v3, %v3982_v44  ;;  %v668_v12 = vcombine.high %v664_v7, %v664_v7  ;;  %v692_v13 = vrot.slane %v664_v7, %v3972_v38 }
 0x142   : > { %v3361_v63 = vpop.f32.mrb[6].mxu1  ;;  %3383 = vmatpush3.xpose.msk.msra.mxu1 %vm404_vm1, %v3997_v58  ;;  %v712_v14 = vmul.f32 %v684_v8, %v3982_v44 }
 0x143   : > { %v609_v2 = vpop.f32.mrb[7].mxu1  ;;  %3370 = vmatmul.mubr.msk.f32.vlgmr.msra.gmra.mrb[4].mxu0 %vm404_vm1, %v710_v62  ;;  %3392 = vmatprep.subr.mxu1 %v4782_v1  ;;  %v4048_v15 = vadd.f32 %v3361_v63, %v3970_v32  ;;  %v700_v16 = vrot.slane %v668_v12, %v3972_v38  ;;  %v714_v17 = vmul.f32 %v692_v13, %v3982_v44 }
 0x144   : > { %v4011_v5 = vadd.f32 %v3970_v32, %v609_v2  ;;  %3373 = vmatpush3.xpose.msk.msra.mxu0 %vm404_vm1, %v3994_v57  ;;  %3374 = vmatprep.mubr.msk.f32.mxu0 %vm3705_vm0, %v4782_v1 }
 0x145   : > { %3385 = vmatmul.mubr.msk.f32.vlgmr.msra.gmra.mrb[8].mxu1 %vm404_vm1, %v713_v4  ;;  %3377 = vmatprep.subr.mxu0 %v4782_v1  ;;  %v716_v18 = vmul.f32 %v700_v16, %v3982_v44 }
 0x146   : > { %3393 = vmatpush3.xpose.msk.msra.mxu1 %vm404_vm1, %v4011_v5  ;;  %3394 = vmatprep.mubr.msk.f32.mxu1 %vm3705_vm0, %v4782_v1 }
 0x147   : > { %3375 = vmatmul.mubr.msk.f32.vlgmr.msra.gmra.mrb[6].mxu0 %vm404_vm1, %v711_v9  ;;  %3402 = vmatprep.subr.mxu1 %v4782_v1 }
 0x148   : > { %3378 = vmatpush3.xpose.msk.msra.mxu0 %vm404_vm1, %v4016_v6  ;;  %3379 = vmatprep.mubr.msk.f32.mxu0 %vm3705_vm0, %v4782_v1 }
 0x149   : > { %3395 = vmatmul.mubr.msk.f32.vlgmr.msra.gmra.mrb[10].mxu1 %vm404_vm1, %v715_v10  ;;  %3387 = vmatprep.subr.mxu0 %v4782_v1 }
 0x14a   : > { %3404 = vmatprep.mubr.msk.f32.mxu1 %vm3705_vm0, %v4782_v1 }
 0x14b   : > { %3380 = vmatmul.mubr.msk.f32.vlgmr.msra.gmra.mrb[8].mxu0 %vm404_vm1, %v712_v14 }
 0x14c   : > { %3388 = vmatpush3.xpose.msk.msra.mxu0 %vm404_vm1, %v4034_v11  ;;  %3389 = vmatprep.mubr.msk.f32.mxu0 %vm3705_vm0, %v4782_v1 }
 0x14d   : > { %3397 = vmatprep.subr.mxu0 %v4782_v1 }
 0x14f   : > { %3390 = vmatmul.mubr.msk.f32.vlgmr.msra.gmra.mrb[10].mxu0 %vm404_vm1, %v714_v17 }
 0x150   : > { %3398 = vmatpush3.xpose.msk.msra.mxu0 %vm404_vm1, %v4048_v15  ;;  %3399 = vmatprep.mubr.msk.f32.mxu0 %vm3705_vm0, %v4782_v1 }
 0x151   : > { %3407 = vmatprep.subr.mxu0 %v4782_v1 }
 0x153   : > { %3400 = vmatmul.mubr.msk.f32.vlgmr.msra.gmra.mrb[12].mxu0 %vm404_vm1, %v716_v18 }
 0x154   : > { %3409 = vmatprep.mubr.msk.f32.mxu0 %vm3705_vm0, %v4782_v1 }
 0x212   : > { %v789_v19 = vpop.f32.mrb[2].mxu0 }
 0x213   : > { %v1326_v20 = vsel %vm1325_vm2, %v789_v19, -inf  ;;  %v3366_v21 = vpop.f32.mrb[3].mxu0 }
 0x214   : > { %1327 = vmax.xlane.f32.xlu0 %v1326_v20 }
 0x216   : > { %v865_v22 = vpop.f32.mrb[4].mxu0 }
 0x217   : > { %v3371_v23 = vpop.f32.mrb[5].mxu0  ;;  %v1329_v24 = vsel %vm1325_vm2, %v865_v22, -inf }
 0x218   : > { %v1093_v26 = vpop.f32.mrb[8].mxu1  ;;  %1330 = vmax.xlane.f32.xlu0 %v1329_v24 }
 0x219   : > { %v3386_v27 = vpop.f32.mrb[9].mxu1  ;;  %v1338_v30 = vsel %vm1325_vm2, %v1093_v26, -inf }
 0x21a   : > { %v941_v28 = vpop.f32.mrb[6].mxu0 }
 0x21b   : > { %v3376_v29 = vpop.f32.mrb[7].mxu0  ;;  %v1332_v31 = vsel %vm1325_vm2, %v941_v28, -inf }
 0x21c   : > { %v1245_v32 = vpop.f32.mrb[10].mxu1  ;;  %1339 = vmax.xlane.f32.xlu0 %v1338_v30  ;;  %1333 = vmax.xlane.f32.xlu1 %v1332_v31 }
 0x21d   : > { %v3396_v33 = vpop.f32.mrb[11].mxu1  ;;  %v1344_v36 = vsel %vm1325_vm2, %v1245_v32, -inf }
 0x21e   : > { %v1017_v34 = vpop.f32.mrb[8].mxu0 }
 0x21f   : > { %v3381_v35 = vpop.f32.mrb[9].mxu0  ;;  %v1335_v37 = vsel %vm1325_vm2, %v1017_v34, -inf }
 0x220   : > { %1345 = vmax.xlane.f32.xlu0 %v1344_v36  ;;  %1336 = vmax.xlane.f32.xlu1 %v1335_v37 }
 0x222   : > { %v1169_v38 = vpop.f32.mrb[10].mxu0 }
 0x223   : > { %v3391_v40 = vpop.f32.mrb[11].mxu0  ;;  %v1341_v41 = vsel %vm1325_vm2, %v1169_v38, -inf }
 0x224   : > { %1342 = vmax.xlane.f32.xlu1 %v1341_v41 }
 0x226   : > { %v1321_v42 = vpop.f32.mrb[12].mxu0 }
 0x227   : > { %v3401_v43 = vpop.f32.mrb[13].mxu0  ;;  %v1347_v44 = vsel %vm1325_vm2, %v1321_v42, -inf }
 0x228   : > { %1348 = vmax.xlane.f32.xlu1 %v1347_v44 }
 0x2a1   : > { %v1328_v45 = vpop.xlane.xlu0 %1327 }
 0x2a2   : > { %v1350_v46 = vsub.f32 %v789_v19, %v1328_v45 }
 0x2a4   : > { %v1358_v47 = vmul.f32 1.442695, %v1350_v46 }
 0x2a5   : > { %v1331_v48 = vpop.xlane.xlu0 %1330 }
 0x2a6   : > { %3537 = vpow2.f32 %v1358_v47  ;;  %v1351_v49 = vsub.f32 %v865_v22, %v1331_v48 }
 0x2a8   : > { %v1360_v50 = vmul.f32 1.442695, %v1351_v49 }
 0x2a9   : > { %v1340_v51 = vpop.xlane.xlu0 %1339  ;;  %v1334_v52 = vpop.xlane.xlu1 %1333 }
 0x2aa   : > { %3539 = vpow2.f32 %v1360_v50  ;;  %v1354_v54 = vsub.f32 %v1093_v26, %v1340_v51  ;;  %v1352_v55 = vsub.f32 %v941_v28, %v1334_v52 }
 0x2ac   : > { %v1362_v56 = vmul.f32 1.442695, %v1352_v55  ;;  %v1366_v59 = vmul.f32 1.442695, %v1354_v54 }
 0x2ad   : > { %v1346_v60 = vpop.xlane.xlu0 %1345  ;;  %v1337_v61 = vpop.xlane.xlu1 %1336 }
 0x2ae   : > { %v1356_v62 = vsub.f32 %v1245_v32, %v1346_v60  ;;  %v1353_v63 = vsub.f32 %v1017_v34, %v1337_v61  ;;  %3541 = vpow2.f32 %v1362_v56 }
 0x2af   : > { %3543 = vpow2.f32 %v1366_v59 }
 0x2b0   : > { %v3538_v2 = vpop.eup %3537  ;;  %v1364_v3 = vmul.f32 1.442695, %v1353_v63  ;;  %v1370_v4 = vmul.f32 1.442695, %v1356_v62 }
 0x2b1   : > { %v1343_v7 = vpop.xlane.xlu1 %1342  ;;  %v1374_v8 = vsel %vm1325_vm2, %v3538_v2, 0.0 }
 0x2b2   : > { %v1355_v9 = vsub.f32 %v1169_v38, %v1343_v7  ;;  %1375 = vadd.xlane.f32.xlu0 %v1374_v8  ;;  %3545 = vpow2.f32 %v1364_v3  ;;  %v4116_v7 = vand.u32 127, %v624_v25 }
 0x2b3   : > { %3547 = vpow2.f32 %v1370_v4 }
 0x2b4   : > { %v3540_v10 = vpop.eup %3539  ;;  %v1368_v12 = vmul.f32 1.442695, %v1355_v9 }
 0x2b5   : > { %v1349_v13 = vpop.xlane.xlu1 %1348  ;;  %v1377_v14 = vsel %vm1325_vm2, %v3540_v10, 0.0 }
 0x2b6   : > { %3549 = vpow2.f32 %v1368_v12  ;;  %v1357_v16 = vsub.f32 %v1321_v42, %v1349_v13  ;;  %1378 = vadd.xlane.f32.xlu1 %v1377_v14 }
 0x2b8   : > { %v1372_v17 = vmul.f32 1.442695, %v1357_v16  ;;  %v3542_v18 = vpop.eup %3541 }
 0x2b9   : > { %v1380_v19 = vsel %vm1325_vm2, %v3542_v18, 0.0  ;;  %v3544_v20 = vpop.eup %3543 }
 0x2ba   : > { %3551 = vpow2.f32 %v1372_v17  ;;  %1381 = vadd.xlane.f32.xlu0 %v1380_v19  ;;  %v1386_v22 = vsel %vm1325_vm2, %v3544_v20, 0.0 }
 0x2bc   : > { %v3546_v21 = vpop.eup %3545 }
 0x2bd   : > { %v1383_v23 = vsel %vm1325_vm2, %v3546_v21, 0.0  ;;  %v3548_v24 = vpop.eup %3547 }
 0x2be   : > { %1387 = vadd.xlane.f32.xlu0 %v1386_v22  ;;  %1384 = vadd.xlane.f32.xlu1 %v1383_v23  ;;  %v1392_v28 = vsel %vm1325_vm2, %v3548_v24, 0.0 }
 0x2c0   : > { %v3550_v26 = vpop.eup %3549 }
 0x2c1   : > { %v1389_v27 = vsel %vm1325_vm2, %v3550_v26, 0.0 }
 0x2c2   : > { %1393 = vadd.xlane.f32.xlu0 %v1392_v28  ;;  %1390 = vadd.xlane.f32.xlu1 %v1389_v27 }
 0x2c4   : > { %v3552_v29 = vpop.eup %3551 }
 0x2c5   : > { %v1395_v30 = vsel %vm1325_vm2, %v3552_v29, 0.0 }
 0x2c6   : > { %1396 = vadd.xlane.f32.xlu1 %v1395_v30 }
 0x33f   : > { %v1376_v31 = vpop.xlane.xlu0 %1375 }
 0x340   : > { %3553 = vrcp.f32 %v1376_v31 }
 0x343   : > { %v1379_v32 = vpop.xlane.xlu1 %1378 }
 0x344   : > { %3555 = vrcp.f32 %v1379_v32 }
 0x347   : > { %v1382_v33 = vpop.xlane.xlu0 %1381 }
 0x348   : > { %3557 = vrcp.f32 %v1382_v33 }
 0x34a   : > { %v3554_v34 = vpop.eup %3553 }
 0x34b   : > { %v4083_v35 = vmul.f32 %v3554_v34, %v3538_v2  ;;  %v1388_v36 = vpop.xlane.xlu0 %1387  ;;  %v1385_v37 = vpop.xlane.xlu1 %1384 }
 0x34c   : > { %3559 = vrcp.f32 %v1388_v36 }
 0x34d   : > { %v1416_v38 = vsel %vm1325_vm2, %v4083_v35, -inf  ;;  %3561 = vrcp.f32 %v1385_v37 }
 0x34e   : > { %v3556_v40 = vpop.eup %3555  ;;  %1417 = vmax.xlane.f32.xlu0 %v1416_v38 }
 0x34f   : > { %v4087_v41 = vmul.f32 %v3556_v40, %v3540_v10  ;;  %v1394_v42 = vpop.xlane.xlu0 %1393  ;;  %v1391_v43 = vpop.xlane.xlu1 %1390 }
 0x350   : > { %3563 = vrcp.f32 %v1394_v42 }
 0x351   : > { %v1419_v44 = vsel %vm1325_vm2, %v4087_v41, -inf  ;;  %3565 = vrcp.f32 %v1391_v43 }
 0x352   : > { %1420 = vmax.xlane.f32.xlu1 %v1419_v44  ;;  %v3558_v45 = vpop.eup %3557 }
 0x353   : > { %v1397_v46 = vpop.xlane.xlu1 %1396  ;;  %v4091_v47 = vmul.f32 %v3558_v45, %v3542_v18 }
 0x354   : > { %3567 = vrcp.f32 %v1397_v46 }
 0x355   : > { %v1422_v48 = vsel %vm1325_vm2, %v4091_v47, -inf }
 0x356   : > { %v3560_v49 = vpop.eup %3559  ;;  %1423 = vmax.xlane.f32.xlu0 %v1422_v48 }
 0x357   : > { %v3562_v50 = vpop.eup %3561  ;;  %v4095_v51 = vmul.f32 %v3560_v49, %v3544_v20 }
 0x358   : > { %v4097_v52 = vmul.f32 %v3562_v50, %v3546_v21 }
 0x359   : > { %v1428_v54 = vsel %vm1325_vm2, %v4095_v51, -inf }
 0x35a   : > { %v3564_v55 = vpop.eup %3563  ;;  %1429 = vmax.xlane.f32.xlu0 %v1428_v54  ;;  %v1425_v56 = vsel %vm1325_vm2, %v4097_v52, -inf }
 0x35b   : > { %v3566_v59 = vpop.eup %3565  ;;  %1426 = vmax.xlane.f32.xlu1 %v1425_v56  ;;  %v4103_v60 = vmul.f32 %v3564_v55, %v3548_v24 }
 0x35c   : > { %v4105_v61 = vmul.f32 %v3566_v59, %v3550_v26 }
 0x35d   : > { %v1434_v62 = vsel %vm1325_vm2, %v4103_v60, -inf }
 0x35e   : > { %v3568_v63 = vpop.eup %3567  ;;  %1435 = vmax.xlane.f32.xlu0 %v1434_v62  ;;  %v1431_v2 = vsel %vm1325_vm2, %v4105_v61, -inf }
 0x35f   : > { %1432 = vmax.xlane.f32.xlu1 %v1431_v2  ;;  %v4111_v3 = vmul.f32 %v3568_v63, %v3552_v29 }
 0x361   : > { %4799 = vst [vmem:[#allocation13_spill] sm:$0xff] %v4111_v3  ;;  %v1437_v4 = vsel %vm1325_vm2, %v4111_v3, -inf }
 0x363   : > { %1438 = vmax.xlane.f32.xlu1 %v1437_v4 }
 0x3db   : > { %v1418_v8 = vpop.xlane.xlu0 %1417 }
 0x3dc   : > { %vm1440_vm3 = vcmp.eq.f32.partialorder %v4083_v35, %v1418_v8 }
 0x3dd   : > { %v1448_v9 = vsel %vm1440_vm3, %v4116_v7, 8 }
 0x3de   : > { %v1456_v10 = vsel %vm1325_vm2, %v1448_v9, 2147483647 }
 0x3df   : > { %v1421_v12 = vpop.xlane.xlu1 %1420  ;;  %v1458_v13 = vshra.s32 %v1456_v10, 16  ;;  %v1457_v59 = vand.u32 65535, %v1456_v10 }
 0x3e0   : > { %vm1441_vm4 = vcmp.eq.f32.partialorder %v4087_v41, %v1421_v12 }
 0x3e1   : > { %v1449_v14 = vsel %vm1441_vm4, %v4116_v7, 8  ;;  %v1460_v16 = vcvt.s32.f32 %v1458_v13  ;;  %v1459_v63 = vcvt.s32.f32 %v1457_v59 }
 0x3e2   : > { %v1471_v17 = vsel %vm1325_vm2, %v1449_v14, 2147483647 }
 0x3e3   : > { %1461 = vmin.xlane.f32.xlu0 %v1460_v16  ;;  %v1473_v18 = vshra.s32 %v1471_v17, 16  ;;  %v1424_v25 = vpop.xlane.xlu0 %1423  ;;  %v1472_v2 = vand.u32 65535, %v1471_v17 }
 0x3e4   : > { %vm1442_vm5 = vcmp.eq.f32.partialorder %v4091_v47, %v1424_v25 }
 0x3e5   : > { %v1475_v19 = vcvt.s32.f32 %v1473_v18  ;;  %v1450_v20 = vsel %vm1442_vm5, %v4116_v7, 8  ;;  %v1474_v9 = vcvt.s32.f32 %v1472_v2 }
 0x3e6   : > { %v1486_v21 = vsel %vm1325_vm2, %v1450_v20, 2147483647 }
 0x3e7   : > { %1476 = vmin.xlane.f32.xlu1 %v1475_v19  ;;  %v1430_v22 = vpop.xlane.xlu0 %1429  ;;  %v1488_v23 = vshra.s32 %v1486_v21, 16  ;;  %v1487_v12 = vand.u32 65535, %v1486_v21 }
 0x3e8   : > { %vm1444_vm6 = vcmp.eq.f32.partialorder %v4095_v51, %v1430_v22  ;;  %v1427_v24 = vpop.xlane.xlu1 %1426 }
 0x3e9   : > { %v1452_v26 = vsel %vm1444_vm6, %v4116_v7, 8  ;;  %vm1443_vm7 = vcmp.eq.f32.partialorder %v4097_v52, %v1427_v24  ;;  %v1490_v27 = vcvt.s32.f32 %v1488_v23  ;;  %v1489_v18 = vcvt.s32.f32 %v1487_v12 }
 0x3ea   : > { %v1451_v28 = vsel %vm1443_vm7, %v4116_v7, 8  ;;  %v1516_v29 = vsel %vm1325_vm2, %v1452_v26, 2147483647 }
 0x3eb   : > { %1491 = vmin.xlane.f32.xlu0 %v1490_v27  ;;  %v1436_v30 = vpop.xlane.xlu0 %1435  ;;  %v1518_v31 = vshra.s32 %v1516_v29, 16  ;;  %v1501_v32 = vsel %vm1325_vm2, %v1451_v28, 2147483647  ;;  %v1517_v25 = vand.u32 65535, %v1516_v29 }
 0x3ec   : > { %vm1446_vm8 = vcmp.eq.f32.partialorder %v4103_v60, %v1436_v30  ;;  %v1433_v33 = vpop.xlane.xlu1 %1432  ;;  %v1503_v34 = vshra.s32 %v1501_v32, 16  ;;  %v1502_v20 = vand.u32 65535, %v1501_v32 }
 0x3ed   : > { %v1454_v36 = vsel %vm1446_vm8, %v4116_v7, 8  ;;  %vm1445_vm9 = vcmp.eq.f32.partialorder %v4105_v61, %v1433_v33  ;;  %v1520_v37 = vcvt.s32.f32 %v1518_v31  ;;  %v1519_v23 = vcvt.s32.f32 %v1517_v25 }
 0x3ee   : > { %v1453_v38 = vsel %vm1445_vm9, %v4116_v7, 8  ;;  %v1505_v40 = vcvt.s32.f32 %v1503_v34  ;;  %v1546_v42 = vsel %vm1325_vm2, %v1454_v36, 2147483647 }
 0x3ef   : > { %1521 = vmin.xlane.f32.xlu0 %v1520_v37  ;;  %v1548_v43 = vshra.s32 %v1546_v42, 16  ;;  %v1531_v44 = vsel %vm1325_vm2, %v1453_v38, 2147483647  ;;  %v1547_v24 = vand.u32 65535, %v1546_v42 }
 0x3f0   : > { %1506 = vmin.xlane.f32.xlu1 %v1505_v40  ;;  %v1439_v45 = vpop.xlane.xlu1 %1438  ;;  %v1533_v46 = vshra.s32 %v1531_v44, 16  ;;  %v1532_v26 = vand.u32 65535, %v1531_v44 }
 0x3f1   : > { %vm1447_vm10 = vcmp.eq.f32.partialorder %v4111_v3, %v1439_v45  ;;  %v1550_v48 = vcvt.s32.f32 %v1548_v43  ;;  %v1549_v30 = vcvt.s32.f32 %v1547_v24 }
 0x3f2   : > { %v1455_v49 = vsel %vm1447_vm10, %v4116_v7, 8  ;;  %v1535_v50 = vcvt.s32.f32 %v1533_v46 }
 0x3f3   : > { %1551 = vmin.xlane.f32.xlu0 %v1550_v48  ;;  %v1561_v54 = vsel %vm1325_vm2, %v1455_v49, 2147483647 }
 0x3f4   : > { %1536 = vmin.xlane.f32.xlu1 %v1535_v50  ;;  %v1563_v55 = vshra.s32 %v1561_v54, 16  ;;  %v1562_v29 = vand.u32 65535, %v1561_v54 }
 0x3f6   : > { %v1565_v56 = vcvt.s32.f32 %v1563_v55  ;;  %v1564_v36 = vcvt.s32.f32 %v1562_v29 }
 0x3f8   : > { %1566 = vmin.xlane.f32.xlu1 %v1565_v56 }
 0x470   : > { %v1462_v62 = vpop.xlane.xlu0 %1461 }
 0x471   : > { %vm1463_vm11 = vcmp.eq.f32.partialorder %v1460_v16, %v1462_v62  ;;  %v1504_v16 = vcvt.s32.f32 %v1502_v20  ;;  %v1468_v38 = vcvt.f32.s32 %v1462_v62 }
 0x472   : > { %v1464_v4 = vsel %vm1463_vm11, %v1459_v63, inf }
 0x473   : > { %1465 = vmin.xlane.f32.xlu0 %v1464_v4  ;;  %v1469_v42 = vshll.u32 %v1468_v38, 16 }
 0x474   : > { %v1477_v8 = vpop.xlane.xlu1 %1476 }
 0x475   : > { %vm1478_vm12 = vcmp.eq.f32.partialorder %v1475_v19, %v1477_v8  ;;  %v1483_v43 = vcvt.f32.s32 %v1477_v8 }
 0x476   : > { %v1479_v13 = vsel %vm1478_vm12, %v1474_v9, inf }
 0x477   : > { %1480 = vmin.xlane.f32.xlu1 %v1479_v13 }
 0x478   : > { %v1492_v14 = vpop.xlane.xlu0 %1491 }
 0x479   : > { %vm1493_vm13 = vcmp.eq.f32.partialorder %v1490_v27, %v1492_v14  ;;  %v1534_v27 = vcvt.s32.f32 %v1532_v26 }
 0x47a   : > { %v1494_v22 = vsel %vm1493_vm13, %v1489_v18, inf }
 0x47b   : > { %1495 = vmin.xlane.f32.xlu0 %v1494_v22 }
 0x47c   : > { %v1522_v10 = vpop.xlane.xlu0 %1521 }
 0x47d   : > { %v1507_v17 = vpop.xlane.xlu1 %1506  ;;  %vm1523_vm14 = vcmp.eq.f32.partialorder %v1520_v37, %v1522_v10  ;;  %v1528_v59 = vcvt.f32.s32 %v1522_v10 }
 0x47e   : > { %v1524_v28 = vsel %vm1523_vm14, %v1519_v23, inf  ;;  %vm1508_vm15 = vcmp.eq.f32.partialorder %v1505_v40, %v1507_v17  ;;  %v1513_v8 = vcvt.f32.s32 %v1507_v17 }
 0x47f   : > { %1525 = vmin.xlane.f32.xlu0 %v1524_v28  ;;  %v1509_v19 = vsel %vm1508_vm15, %v1504_v16, inf  ;;  %v1529_v13 = vshll.u32 %v1528_v59, 16 }
 0x480   : > { %1510 = vmin.xlane.f32.xlu1 %v1509_v19  ;;  %v1552_v21 = vpop.xlane.xlu0 %1551  ;;  %v1514_v10 = vshll.u32 %v1513_v8, 16 }
 0x481   : > { %v1537_v31 = vpop.xlane.xlu1 %1536  ;;  %vm1553_vm3 = vcmp.eq.f32.partialorder %v1550_v48, %v1552_v21  ;;  %v1484_v48 = vshll.u32 %v1483_v43, 16  ;;  %v1558_v18 = vcvt.f32.s32 %v1552_v21 }
 0x482   : > { %v1554_v32 = vsel %vm1553_vm3, %v1549_v30, inf  ;;  %vm1538_vm4 = vcmp.eq.f32.partialorder %v1535_v50, %v1537_v31  ;;  %v1498_v50 = vcvt.f32.s32 %v1492_v14  ;;  %v1543_v25 = vcvt.f32.s32 %v1537_v31 }
 0x483   : > { %1555 = vmin.xlane.f32.xlu0 %v1554_v32  ;;  %v1539_v33 = vsel %vm1538_vm4, %v1534_v27, inf  ;;  %v1559_v19 = vshll.u32 %v1558_v18, 16 }
 0x484   : > { %1540 = vmin.xlane.f32.xlu1 %v1539_v33  ;;  %v1499_v63 = vshll.u32 %v1498_v50, 16  ;;  %v1544_v21 = vshll.u32 %v1543_v25, 16 }
 0x485   : > { %v4142_v34 = vpop.xlane.xlu1 %1566 }
 0x486   : > { %vm1568_vm5 = vcmp.eq.f32.partialorder %v1565_v56, %v4142_v34  ;;  %v1573_v27 = vcvt.f32.s32 %v4142_v34 }
 0x487   : > { %v1569_v37 = vsel %vm1568_vm5, %v1564_v36, inf }
 0x488   : > { %1570 = vmin.xlane.f32.xlu1 %v1569_v37 }
 0x500   : > { %v1466_v40 = vpop.xlane.xlu0 %1465 }
 0x501   : > { %v1467_v44 = vcvt.f32.s32 %v1466_v40 }
 0x503   : > { %v4145_v45 = vadd.s32 %v1469_v42, %v1467_v44  ;;  %v1574_v42 = vshll.u32 %v1573_v27, 16 }
 0x504   : > { %v1481_v46 = vpop.xlane.xlu1 %1480 }
 0x505   : > { %v1482_v49 = vcvt.f32.s32 %v1481_v46  ;;  %vm1576_vm6 = vcmp.eq.s32.totalorder %v4116_v7, %v4145_v45 }
 0x506   : > { %v4153_v54 = vsel %vm1576_vm6, -inf, %v4083_v35 }
 0x507   : > { %v4155_v55 = vadd.s32 %v1484_v48, %v1482_v49  ;;  %v1600_v56 = vsel %vm1325_vm2, %v4153_v54, -inf }
 0x508   : > { %1601 = vmax.xlane.f32.xlu0 %v1600_v56  ;;  %v1496_v62 = vpop.xlane.xlu0 %1495 }
 0x509   : > { %vm1577_vm7 = vcmp.eq.s32.totalorder %v4116_v7, %v4155_v55  ;;  %v1497_v2 = vcvt.f32.s32 %v1496_v62 }
 0x50a   : > { %v4165_v4 = vsel %vm1577_vm7, -inf, %v4087_v41 }
 0x50b   : > { %v1603_v9 = vsel %vm1325_vm2, %v4165_v4, -inf  ;;  %v4169_v12 = vadd.s32 %v1499_v63, %v1497_v2 }
 0x50c   : > { %1604 = vmax.xlane.f32.xlu1 %v1603_v9  ;;  %v1526_v14 = vpop.xlane.xlu0 %1525 }
 0x50d   : > { %v1527_v20 = vcvt.f32.s32 %v1526_v14  ;;  %v1511_v22 = vpop.xlane.xlu1 %1510  ;;  %vm1578_vm8 = vcmp.eq.s32.totalorder %v4116_v7, %v4169_v12 }
 0x50e   : > { %v1512_v23 = vcvt.f32.s32 %v1511_v22  ;;  %v4177_v24 = vsel %vm1578_vm8, -inf, %v4091_v47 }
 0x50f   : > { %v4179_v17 = vadd.s32 %v1529_v13, %v1527_v20  ;;  %v1606_v16 = vsel %vm1325_vm2, %v4177_v24, -inf }
 0x510   : > { %v4183_v26 = vadd.s32 %v1514_v10, %v1512_v23  ;;  %1607 = vmax.xlane.f32.xlu0 %v1606_v16  ;;  %v1556_v28 = vpop.xlane.xlu0 %1555 }
 0x511   : > { %v1557_v30 = vcvt.f32.s32 %v1556_v28  ;;  %v1541_v31 = vpop.xlane.xlu1 %1540  ;;  %vm1580_vm9 = vcmp.eq.s32.totalorder %v4116_v7, %v4179_v17 }
 0x512   : > { %v1542_v29 = vcvt.f32.s32 %v1541_v31  ;;  %v4192_v32 = vsel %vm1580_vm9, -inf, %v4095_v51  ;;  %vm1579_vm10 = vcmp.eq.s32.totalorder %v4116_v7, %v4183_v26 }
 0x513   : > { %v4196_v33 = vadd.s32 %v1559_v19, %v1557_v30  ;;  %v1612_v36 = vsel %vm1325_vm2, %v4192_v32, -inf  ;;  %v4204_v34 = vsel %vm1579_vm10, -inf, %v4097_v52 }
 0x514   : > { %v4206_v37 = vadd.s32 %v1544_v21, %v1542_v29  ;;  %1613 = vmax.xlane.f32.xlu0 %v1612_v36  ;;  %v1609_v38 = vsel %vm1325_vm2, %v4204_v34, -inf }
 0x515   : > { %1610 = vmax.xlane.f32.xlu1 %v1609_v38  ;;  %v1571_v40 = vpop.xlane.xlu1 %1570  ;;  %vm1582_vm11 = vcmp.eq.s32.totalorder %v4116_v7, %v4196_v33 }
 0x516   : > { %v1572_v43 = vcvt.f32.s32 %v1571_v40  ;;  %v4216_v44 = vsel %vm1582_vm11, -inf, %v4103_v60  ;;  %vm1581_vm12 = vcmp.eq.s32.totalorder %v4116_v7, %v4206_v37 }
 0x517   : > { %v1618_v46 = vsel %vm1325_vm2, %v4216_v44, -inf  ;;  %v4226_v48 = vsel %vm1581_vm12, -inf, %v4105_v61 }
 0x518   : > { %v4228_v49 = vadd.s32 %v1574_v42, %v1572_v43  ;;  %1619 = vmax.xlane.f32.xlu0 %v1618_v46  ;;  %v1615_v50 = vsel %vm1325_vm2, %v4226_v48, -inf }
 0x519   : > { %1616 = vmax.xlane.f32.xlu1 %v1615_v50 }
 0x51a   : > { %vm1583_vm13 = vcmp.eq.s32.totalorder %v4116_v7, %v4228_v49 }
 0x51b   : > { %v4238_v56 = vsel %vm1583_vm13, -inf, %v4111_v3 }
 0x51c   : > { %v1621_v59 = vsel %vm1325_vm2, %v4238_v56, -inf }
 0x51d   : > { %1622 = vmax.xlane.f32.xlu1 %v1621_v59 }
 0x595   : > { %v1602_v62 = vpop.xlane.xlu0 %1601 }
 0x596   : > { %vm1624_vm14 = vcmp.eq.f32.partialorder %v4153_v54, %v1602_v62 }
 0x597   : > { %v1632_v63 = vsel %vm1624_vm14, %v4116_v7, 8 }
 0x598   : > { %v1640_v2 = vsel %vm1325_vm2, %v1632_v63, 2147483647 }
 0x599   : > { %v1605_v8 = vpop.xlane.xlu1 %1604  ;;  %v1642_v9 = vshra.s32 %v1640_v2, 16 }
 0x59a   : > { %vm1625_vm15 = vcmp.eq.f32.partialorder %v4165_v4, %v1605_v8 }
 0x59b   : > { %v1633_v13 = vsel %vm1625_vm15, %v4116_v7, 8  ;;  %v1644_v14 = vcvt.s32.f32 %v1642_v9 }
 0x59c   : > { %v1655_v18 = vsel %vm1325_vm2, %v1633_v13, 2147483647 }
 0x59d   : > { %1645 = vmin.xlane.f32.xlu0 %v1644_v14  ;;  %v1657_v25 = vshra.s32 %v1655_v18, 16  ;;  %v1608_v20 = vpop.xlane.xlu0 %1607 }
 0x59e   : > { %vm1626_vm3 = vcmp.eq.f32.partialorder %v4177_v24, %v1608_v20 }
 0x59f   : > { %v1659_v22 = vcvt.s32.f32 %v1657_v25  ;;  %v1634_v10 = vsel %vm1626_vm3, %v4116_v7, 8 }
 0x5a0   : > { %v1670_v23 = vsel %vm1325_vm2, %v1634_v10, 2147483647 }
 0x5a1   : > { %1660 = vmin.xlane.f32.xlu1 %v1659_v22  ;;  %v1614_v16 = vpop.xlane.xlu0 %1613  ;;  %v1672_v28 = vshra.s32 %v1670_v23, 16 }
 0x5a2   : > { %vm1628_vm4 = vcmp.eq.f32.partialorder %v4192_v32, %v1614_v16  ;;  %v1611_v19 = vpop.xlane.xlu1 %1610 }
 0x5a3   : > { %v1636_v21 = vsel %vm1628_vm4, %v4116_v7, 8  ;;  %vm1627_vm5 = vcmp.eq.f32.partialorder %v4204_v34, %v1611_v19  ;;  %v1674_v30 = vcvt.s32.f32 %v1672_v28 }
 0x5a4   : > { %v1700_v31 = vsel %vm1325_vm2, %v1636_v21, 2147483647  ;;  %v1635_v27 = vsel %vm1627_vm5, %v4116_v7, 8  ;;  %v1641_v21 = vand.u32 65535, %v1640_v2 }
 0x5a5   : > { %1675 = vmin.xlane.f32.xlu0 %v1674_v30  ;;  %v1620_v29 = vpop.xlane.xlu0 %1619  ;;  %v1702_v36 = vshra.s32 %v1700_v31, 16  ;;  %v1685_v38 = vsel %vm1325_vm2, %v1635_v27, 2147483647 }
 0x5a6   : > { %vm1630_vm14 = vcmp.eq.f32.partialorder %v4216_v44, %v1620_v29  ;;  %v1617_v40 = vpop.xlane.xlu1 %1616  ;;  %v1687_v42 = vshra.s32 %v1685_v38, 16  ;;  %v1643_v29 = vcvt.s32.f32 %v1641_v21  ;;  %v1686_v0 = vand.u32 65535, %v1685_v38 }
 0x5a7   : > { %v1638_v43 = vsel %vm1630_vm14, %v4116_v7, 8  ;;  %vm1629_vm15 = vcmp.eq.f32.partialorder %v4226_v48, %v1617_v40  ;;  %v1704_v46 = vcvt.s32.f32 %v1702_v36  ;;  %v1656_v36 = vand.u32 65535, %v1655_v18 }
 0x5a8   : > { %v1730_v50 = vsel %vm1325_vm2, %v1638_v43, 2147483647  ;;  %v1637_v59 = vsel %vm1629_vm15, %v4116_v7, 8  ;;  %v1689_v62 = vcvt.s32.f32 %v1687_v42 }
 0x5a9   : > { %1705 = vmin.xlane.f32.xlu0 %v1704_v46  ;;  %v1732_v63 = vshra.s32 %v1730_v50, 16  ;;  %v1715_v8 = vsel %vm1325_vm2, %v1637_v59, 2147483647  ;;  %v1658_v43 = vcvt.s32.f32 %v1656_v36  ;;  %v1671_v59 = vand.u32 65535, %v1670_v23 }
 0x5aa   : > { %1690 = vmin.xlane.f32.xlu1 %v1689_v62  ;;  %v1623_v9 = vpop.xlane.xlu1 %1622  ;;  %v1717_v13 = vshra.s32 %v1715_v8, 16  ;;  %v1731_v21 = vand.u32 65535, %v1730_v50 }
 0x5ab   : > { %vm1631_vm3 = vcmp.eq.f32.partialorder %v4238_v56, %v1623_v9  ;;  %v1734_v25 = vcvt.s32.f32 %v1732_v63 }
 0x5ac   : > { %v1639_v20 = vsel %vm1631_vm3, %v4116_v7, 8  ;;  %v1719_v10 = vcvt.s32.f32 %v1717_v13  ;;  %v1673_v13 = vcvt.s32.f32 %v1671_v59  ;;  %v1733_v36 = vcvt.s32.f32 %v1731_v21 }
 0x5ad   : > { %1735 = vmin.xlane.f32.xlu0 %v1734_v25  ;;  %v1745_v16 = vsel %vm1325_vm2, %v1639_v20, 2147483647  ;;  %v1701_v20 = vand.u32 65535, %v1700_v31 }
 0x5ae   : > { %1720 = vmin.xlane.f32.xlu1 %v1719_v10  ;;  %v1747_v28 = vshra.s32 %v1745_v16, 16  ;;  %v1746_v31 = vand.u32 65535, %v1745_v16  ;;  %v4800_v16 = vmov 0.0  }
 0x5af   : > { %v1703_v1 = vcvt.s32.f32 %v1701_v20  ;;  %v1593_v45 = vsel %vm1577_vm7, 1.0, %v4800_v16  ;;  %v1594_v55 = vsel %vm1578_vm8, 1.0, %v4800_v16 }
 0x5b0   : > { %v1749_v19 = vcvt.s32.f32 %v1747_v28 }
 0x5b2   : > { %1750 = vmin.xlane.f32.xlu1 %v1749_v19 }
 0x62a   : > { %v1646_v27 = vpop.xlane.xlu0 %1645 }
 0x62b   : > { %vm1647_vm4 = vcmp.eq.f32.partialorder %v1644_v14, %v1646_v27  ;;  %v1688_v14 = vcvt.s32.f32 %v1686_v0 }
 0x62c   : > { %v1648_v40 = vsel %vm1647_vm4, %v1643_v29, inf  ;;  %v1716_v29 = vand.u32 65535, %v1715_v8 }
 0x62d   : > { %1649 = vmin.xlane.f32.xlu0 %v1648_v40 }
 0x62e   : > { %v1661_v42 = vpop.xlane.xlu1 %1660 }
 0x62f   : > { %vm1662_vm5 = vcmp.eq.f32.partialorder %v1659_v22, %v1661_v42 }
 0x630   : > { %v1663_v63 = vsel %vm1662_vm5, %v1658_v43, inf }
 0x631   : > { %1664 = vmin.xlane.f32.xlu1 %v1663_v63  ;;  %v1667_v63 = vcvt.f32.s32 %v1661_v42 }
 0x632   : > { %v1676_v9 = vpop.xlane.xlu0 %1675 }
 0x633   : > { %vm1677_vm14 = vcmp.eq.f32.partialorder %v1674_v30, %v1676_v9  ;;  %v1718_v30 = vcvt.s32.f32 %v1716_v29  ;;  %v1682_v21 = vcvt.f32.s32 %v1676_v9 }
 0x634   : > { %v1678_v28 = vsel %vm1677_vm14, %v1673_v13, inf }
 0x635   : > { %1679 = vmin.xlane.f32.xlu0 %v1678_v28  ;;  %v1668_v28 = vshll.u32 %v1667_v63, 16 }
 0x636   : > { %v1706_v2 = vpop.xlane.xlu0 %1705 }
 0x637   : > { %v1691_v18 = vpop.xlane.xlu1 %1690  ;;  %vm1707_vm15 = vcmp.eq.f32.partialorder %v1704_v46, %v1706_v2 }
 0x638   : > { %v1708_v40 = vsel %vm1707_vm15, %v1703_v1, inf  ;;  %vm1692_vm3 = vcmp.eq.f32.partialorder %v1689_v62, %v1691_v18  ;;  %v1748_v1 = vcvt.s32.f32 %v1746_v31  ;;  %v1652_v62 = vcvt.f32.s32 %v1646_v27 }
 0x639   : > { %1709 = vmin.xlane.f32.xlu0 %v1708_v40  ;;  %v1693_v22 = vsel %vm1692_vm3, %v1688_v14, inf  ;;  %v1683_v40 = vshll.u32 %v1682_v21, 16  ;;  %v1697_v31 = vcvt.f32.s32 %v1691_v18 }
 0x63a   : > { %1694 = vmin.xlane.f32.xlu1 %v1693_v22  ;;  %v1736_v23 = vpop.xlane.xlu0 %1735  ;;  %v1653_v59 = vshll.u32 %v1652_v62, 16  ;;  %v1712_v22 = vcvt.f32.s32 %v1706_v2 }
 0x63b   : > { %v4266_v43 = vpop.xlane.xlu1 %1720  ;;  %vm1737_vm4 = vcmp.eq.f32.partialorder %v1734_v25, %v1736_v23  ;;  %v1698_v18 = vshll.u32 %v1697_v31, 16  ;;  %v1597_v31 = vsel %vm1581_vm12, 1.0, %v4800_v16 }
 0x63c   : > { %v1738_v38 = vsel %vm1737_vm4, %v1733_v36, inf  ;;  %vm1722_vm5 = vcmp.eq.f32.partialorder %v1719_v10, %v4266_v43  ;;  %v1592_v10 = vsel %vm1576_vm6, 1.0, %v4800_v16  ;;  %v1713_v2 = vshll.u32 %v1712_v22, 16 }
 0x63d   : > { %1739 = vmin.xlane.f32.xlu0 %v1738_v38  ;;  %v1723_v50 = vsel %vm1722_vm5, %v1718_v30, inf  ;;  %v1727_v62 = vcvt.f32.s32 %v4266_v43  ;;  %v1595_v43 = vsel %vm1579_vm10, 1.0, %v4800_v16 }
 0x63e   : > { %1724 = vmin.xlane.f32.xlu1 %v1723_v50 }
 0x63f   : > { %v4269_v0 = vpop.xlane.xlu1 %1750 }
 0x640   : > { %vm1752_vm14 = vcmp.eq.f32.partialorder %v1749_v19, %v4269_v0  ;;  %v1757_v21 = vcvt.f32.s32 %v4269_v0 }
 0x641   : > { %v1753_v46 = vsel %vm1752_vm14, %v1748_v1, inf  ;;  %v1742_v1 = vcvt.f32.s32 %v1736_v23  ;;  %v1596_v23 = vsel %vm1580_vm9, 1.0, %v4800_v16 }
 0x642   : > { %1754 = vmin.xlane.f32.xlu1 %v1753_v46 }
 0x6ba   : > { %v1650_v8 = vpop.xlane.xlu0 %1649 }
 0x6bb   : > { %v1651_v25 = vcvt.f32.s32 %v1650_v8 }
 0x6bd   : > { %v1654_v13 = vadd.s32 %v1653_v59, %v1651_v25 }
 0x6be   : > { %v1665_v20 = vpop.xlane.xlu1 %1664 }
 0x6bf   : > { %v1666_v14 = vcvt.f32.s32 %v1665_v20  ;;  %vm1760_vm15 = vcmp.eq.s32.totalorder %v4116_v7, %v1654_v13 }
 0x6c0   : > { %v4278_v19 = vsel %vm1760_vm15, -inf, %v4153_v54  ;;  %v4280_v27 = vsel %vm1760_vm15, 1.0, %v1592_v10  ;;  %v1743_v10 = vshll.u32 %v1742_v1, 16 }
 0x6c1   : > { %v1669_v29 = vadd.s32 %v1668_v28, %v1666_v14  ;;  %v1784_v42 = vsel %vm1325_vm2, %v4278_v19, -inf  ;;  %v1728_v28 = vshll.u32 %v1727_v62, 16 }
 0x6c2   : > { %1785 = vmax.xlane.f32.xlu0 %v1784_v42  ;;  %v1680_v9 = vpop.xlane.xlu0 %1679 }
 0x6c3   : > { %vm1761_vm6 = vcmp.eq.s32.totalorder %v4116_v7, %v1669_v29  ;;  %v1681_v36 = vcvt.f32.s32 %v1680_v9 }
 0x6c4   : > { %v4290_v54 = vsel %vm1761_vm6, -inf, %v4165_v4  ;;  %v4292_v30 = vsel %vm1761_vm6, 1.0, %v1593_v45 }
 0x6c5   : > { %v1787_v38 = vsel %vm1325_vm2, %v4290_v54, -inf  ;;  %v1684_v50 = vadd.s32 %v1683_v40, %v1681_v36 }
 0x6c6   : > { %1788 = vmax.xlane.f32.xlu1 %v1787_v38  ;;  %v1710_v46 = vpop.xlane.xlu0 %1709  ;;  %v1758_v38 = vshll.u32 %v1757_v21, 16 }
 0x6c7   : > { %v1711_v4 = vcvt.f32.s32 %v1710_v46  ;;  %v1695_v8 = vpop.xlane.xlu1 %1694  ;;  %vm1762_vm7 = vcmp.eq.s32.totalorder %v4116_v7, %v1684_v50 }
 0x6c8   : > { %v1696_v59 = vcvt.f32.s32 %v1695_v8  ;;  %v4303_v63 = vsel %vm1762_vm7, -inf, %v4177_v24  ;;  %v4305_v25 = vsel %vm1762_vm7, 1.0, %v1594_v55 }
 0x6c9   : > { %v1714_v13 = vadd.s32 %v1713_v2, %v1711_v4  ;;  %v1790_v12 = vsel %vm1325_vm2, %v4303_v63, -inf }
 0x6ca   : > { %v1699_v20 = vadd.s32 %v1698_v18, %v1696_v59  ;;  %1791 = vmax.xlane.f32.xlu0 %v1790_v12  ;;  %v1740_v24 = vpop.xlane.xlu0 %1739 }
 0x6cb   : > { %v1741_v14 = vcvt.f32.s32 %v1740_v24  ;;  %v1725_v29 = vpop.xlane.xlu1 %1724  ;;  %vm1764_vm8 = vcmp.eq.s32.totalorder %v4116_v7, %v1714_v13 }
 0x6cc   : > { %v1726_v42 = vcvt.f32.s32 %v1725_v29  ;;  %v4320_v17 = vsel %vm1764_vm8, -inf, %v4192_v32  ;;  %v4322_v45 = vsel %vm1764_vm8, 1.0, %v1596_v23  ;;  %vm1763_vm9 = vcmp.eq.s32.totalorder %v4116_v7, %v1699_v20 }
 0x6cd   : > { %v1744_v26 = vadd.s32 %v1743_v10, %v1741_v14  ;;  %v1796_v40 = vsel %vm1325_vm2, %v4320_v17, -inf  ;;  %v4328_v9 = vsel %vm1763_vm9, -inf, %v4204_v34  ;;  %v4330_v0 = vsel %vm1763_vm9, 1.0, %v1595_v43 }
 0x6ce   : > { %v1729_v22 = vadd.s32 %v1728_v28, %v1726_v42  ;;  %1797 = vmax.xlane.f32.xlu0 %v1796_v40  ;;  %v1793_v36 = vsel %vm1325_vm2, %v4328_v9, -inf  ;;  %v1598_v32 = vsel %vm1582_vm11, 1.0, %v4800_v16 }
 0x6cf   : > { %1794 = vmax.xlane.f32.xlu1 %v1793_v36  ;;  %v1755_v34 = vpop.xlane.xlu1 %1754  ;;  %vm1766_vm10 = vcmp.eq.s32.totalorder %v4116_v7, %v1744_v26 }
 0x6d0   : > { %v1756_v50 = vcvt.f32.s32 %v1755_v34  ;;  %v4344_v55 = vsel %vm1766_vm10, -inf, %v4216_v44  ;;  %v4346_v1 = vsel %vm1766_vm10, 1.0, %v1598_v32  ;;  %vm1765_vm3 = vcmp.eq.s32.totalorder %v4116_v7, %v1729_v22 }
 0x6d1   : > { %v1802_v33 = vsel %vm1325_vm2, %v4344_v55, -inf  ;;  %v4352_v46 = vsel %vm1765_vm3, -inf, %v4226_v48  ;;  %v4354_v37 = vsel %vm1765_vm3, 1.0, %v1597_v31  ;;  %v1599_v44 = vsel %vm1583_vm13, 1.0, %v4800_v16 }
 0x6d2   : > { %v1759_v2 = vadd.s32 %v1758_v38, %v1756_v50  ;;  %1803 = vmax.xlane.f32.xlu0 %v1802_v33  ;;  %v1799_v62 = vsel %vm1325_vm2, %v4352_v46, -inf }
 0x6d3   : > { %1800 = vmax.xlane.f32.xlu1 %v1799_v62 }
 0x6d4   : > { %vm1767_vm11 = vcmp.eq.s32.totalorder %v4116_v7, %v1759_v2 }
 0x6d5   : > { %v4364_v4 = vsel %vm1767_vm11, -inf, %v4238_v56  ;;  %v4366_v48 = vsel %vm1767_vm11, 1.0, %v1599_v44 }
 0x6d6   : > { %v1805_v8 = vsel %vm1325_vm2, %v4364_v4, -inf }
 0x6d7   : > { %1806 = vmax.xlane.f32.xlu1 %v1805_v8 }
 0x74f   : > { %v1786_v18 = vpop.xlane.xlu0 %1785 }
 0x750   : > { %vm1808_vm12 = vcmp.eq.f32.partialorder %v4278_v19, %v1786_v18 }
 0x751   : > { %v1816_v59 = vsel %vm1808_vm12, %v4116_v7, 8 }
 0x752   : > { %v1824_v13 = vsel %vm1325_vm2, %v1816_v59, 2147483647 }
 0x753   : > { %v1789_v49 = vpop.xlane.xlu1 %1788  ;;  %v1826_v12 = vshra.s32 %v1824_v13, 16 }
 0x754   : > { %vm1809_vm13 = vcmp.eq.f32.partialorder %v4290_v54, %v1789_v49 }
 0x755   : > { %v1817_v56 = vsel %vm1809_vm13, %v4116_v7, 8  ;;  %v1828_v23 = vcvt.s32.f32 %v1826_v12 }
 0x756   : > { %v1839_v43 = vsel %vm1325_vm2, %v1817_v56, 2147483647 }
 0x757   : > { %1829 = vmin.xlane.f32.xlu0 %v1828_v23  ;;  %v1841_v10 = vshra.s32 %v1839_v43, 16  ;;  %v1792_v20 = vpop.xlane.xlu0 %1791 }
 0x758   : > { %vm1810_vm4 = vcmp.eq.f32.partialorder %v4303_v63, %v1792_v20 }
 0x759   : > { %v1843_v24 = vcvt.s32.f32 %v1841_v10  ;;  %v1818_v28 = vsel %vm1810_vm4, %v4116_v7, 8 }
 0x75a   : > { %v1854_v21 = vsel %vm1325_vm2, %v1818_v28, 2147483647 }
 0x75b   : > { %1844 = vmin.xlane.f32.xlu1 %v1843_v24  ;;  %v1798_v14 = vpop.xlane.xlu0 %1797  ;;  %v1856_v29 = vshra.s32 %v1854_v21, 16 }
 0x75c   : > { %vm1812_vm5 = vcmp.eq.f32.partialorder %v4320_v17, %v1798_v14  ;;  %v1795_v42 = vpop.xlane.xlu1 %1794 }
 0x75d   : > { %v1820_v26 = vsel %vm1812_vm5, %v4116_v7, 8  ;;  %vm1811_vm14 = vcmp.eq.f32.partialorder %v4328_v9, %v1795_v42  ;;  %v1858_v40 = vcvt.s32.f32 %v1856_v29  ;;  %v1825_v42 = vand.u32 65535, %v1824_v13 }
 0x75e   : > { %v1884_v22 = vsel %vm1325_vm2, %v1820_v26, 2147483647  ;;  %v1819_v36 = vsel %vm1811_vm14, %v4116_v7, 8 }
 0x75f   : > { %v1869_v32 = vsel %vm1325_vm2, %v1819_v36, 2147483647  ;;  %1859 = vmin.xlane.f32.xlu0 %v1858_v40  ;;  %v1804_v31 = vpop.xlane.xlu0 %1803  ;;  %v1886_v38 = vshra.s32 %v1884_v22, 16  ;;  %v1827_v36 = vcvt.s32.f32 %v1825_v42 }
 0x760   : > { %vm1814_vm15 = vcmp.eq.f32.partialorder %v4344_v55, %v1804_v31  ;;  %v1801_v34 = vpop.xlane.xlu1 %1800  ;;  %v1871_v50 = vshra.s32 %v1869_v32, 16  ;;  %v1840_v31 = vand.u32 65535, %v1839_v43 }
 0x761   : > { %v1822_v33 = vsel %vm1814_vm15, %v4116_v7, 8  ;;  %vm1813_vm6 = vcmp.eq.f32.partialorder %v4352_v46, %v1801_v34  ;;  %v1888_v2 = vcvt.s32.f32 %v1886_v38 }
 0x762   : > { %v1914_v62 = vsel %vm1325_vm2, %v1822_v33, 2147483647  ;;  %v1821_v44 = vsel %vm1813_vm6, %v4116_v7, 8  ;;  %v1873_v8 = vcvt.s32.f32 %v1871_v50  ;;  %v1842_v50 = vcvt.s32.f32 %v1840_v31 }
 0x763   : > { %v1899_v18 = vsel %vm1325_vm2, %v1821_v44, 2147483647  ;;  %1889 = vmin.xlane.f32.xlu0 %v1888_v2  ;;  %v1916_v59 = vshra.s32 %v1914_v62, 16  ;;  %v1855_v33 = vand.u32 65535, %v1854_v21  ;;  %v1915_v42 = vand.u32 65535, %v1914_v62 }
 0x764   : > { %1874 = vmin.xlane.f32.xlu1 %v1873_v8  ;;  %v1807_v49 = vpop.xlane.xlu1 %1806  ;;  %v1901_v12 = vshra.s32 %v1899_v18, 16 }
 0x765   : > { %vm1815_vm7 = vcmp.eq.f32.partialorder %v4364_v4, %v1807_v49  ;;  %v1918_v56 = vcvt.s32.f32 %v1916_v59  ;;  %v1857_v49 = vcvt.s32.f32 %v1855_v33  ;;  %v1917_v31 = vcvt.s32.f32 %v1915_v42 }
 0x766   : > { %v1823_v10 = vsel %vm1815_vm7, %v4116_v7, 8  ;;  %v1903_v20 = vcvt.s32.f32 %v1901_v12  ;;  %v1885_v12 = vand.u32 65535, %v1884_v22 }
 0x767   : > { %v1929_v28 = vsel %vm1325_vm2, %v1823_v10, 2147483647  ;;  %1919 = vmin.xlane.f32.xlu0 %v1918_v56  ;;  %v1870_v10 = vand.u32 65535, %v1869_v32 }
 0x768   : > { %1904 = vmin.xlane.f32.xlu1 %v1903_v20  ;;  %v1931_v14 = vshra.s32 %v1929_v28, 16  ;;  %v1887_v3 = vcvt.s32.f32 %v1885_v12  ;;  %v1930_v22 = vand.u32 65535, %v1929_v28 }
 0x76a   : > { %v1933_v29 = vcvt.s32.f32 %v1931_v14 }
 0x76c   : > { %1934 = vmin.xlane.f32.xlu1 %v1933_v29 }
 0x7e4   : > { %v1830_v26 = vpop.xlane.xlu0 %1829 }
 0x7e5   : > { %vm1831_vm8 = vcmp.eq.f32.partialorder %v1828_v23, %v1830_v26  ;;  %v1872_v23 = vcvt.s32.f32 %v1870_v10 }
 0x7e6   : > { %v1832_v38 = vsel %vm1831_vm8, %v1827_v36, inf  ;;  %v1900_v36 = vand.u32 65535, %v1899_v18 }
 0x7e7   : > { %1833 = vmin.xlane.f32.xlu0 %v1832_v38 }
 0x7e8   : > { %v1845_v34 = vpop.xlane.xlu1 %1844 }
 0x7e9   : > { %vm1846_vm9 = vcmp.eq.f32.partialorder %v1843_v24, %v1845_v34 }
 0x7ea   : > { %v1847_v44 = vsel %vm1846_vm9, %v1842_v50, inf }
 0x7eb   : > { %1848 = vmin.xlane.f32.xlu1 %v1847_v44 }
 0x7ec   : > { %v1860_v59 = vpop.xlane.xlu0 %1859 }
 0x7ed   : > { %vm1861_vm10 = vcmp.eq.f32.partialorder %v1858_v40, %v1860_v59  ;;  %v1902_v40 = vcvt.s32.f32 %v1900_v36 }
 0x7ee   : > { %v1862_v14 = vsel %vm1861_vm10, %v1857_v49, inf  ;;  %v1851_v49 = vcvt.f32.s32 %v1845_v34 }
 0x7ef   : > { %1863 = vmin.xlane.f32.xlu0 %v1862_v14  ;;  %v1866_v14 = vcvt.f32.s32 %v1860_v59 }
 0x7f0   : > { %v1890_v13 = vpop.xlane.xlu0 %1889  ;;  %v1852_v28 = vshll.u32 %v1851_v49, 16 }
 0x7f1   : > { %v1875_v43 = vpop.xlane.xlu1 %1874  ;;  %vm1891_vm3 = vcmp.eq.f32.partialorder %v1888_v2, %v1890_v13  ;;  %v1932_v2 = vcvt.s32.f32 %v1930_v22  ;;  %v1867_v34 = vshll.u32 %v1866_v14, 16 }
 0x7f2   : > { %v1892_v38 = vsel %vm1891_vm3, %v1887_v3, inf  ;;  %vm1876_vm11 = vcmp.eq.f32.partialorder %v1873_v8, %v1875_v43  ;;  %v1836_v8 = vcvt.f32.s32 %v1830_v26 }
 0x7f3   : > { %1893 = vmin.xlane.f32.xlu0 %v1892_v38  ;;  %v1877_v24 = vsel %vm1876_vm11, %v1872_v23, inf  ;;  %v1896_v38 = vcvt.f32.s32 %v1890_v13 }
 0x7f4   : > { %1878 = vmin.xlane.f32.xlu1 %v1877_v24  ;;  %v1920_v21 = vpop.xlane.xlu0 %1919  ;;  %v1837_v44 = vshll.u32 %v1836_v8, 16 }
 0x7f5   : > { %v1905_v50 = vpop.xlane.xlu1 %1904  ;;  %vm1921_vm12 = vcmp.eq.f32.partialorder %v1918_v56, %v1920_v21  ;;  %v1926_v22 = vcvt.f32.s32 %v1920_v21 }
 0x7f6   : > { %v1922_v32 = vsel %vm1921_vm12, %v1917_v31, inf  ;;  %vm1906_vm13 = vcmp.eq.f32.partialorder %v1903_v20, %v1905_v50  ;;  %v1881_v31 = vcvt.f32.s32 %v1875_v43 }
 0x7f7   : > { %1923 = vmin.xlane.f32.xlu0 %v1922_v32  ;;  %v1907_v33 = vsel %vm1906_vm13, %v1902_v40, inf  ;;  %v1927_v21 = vshll.u32 %v1926_v22, 16 }
 0x7f8   : > { %1908 = vmin.xlane.f32.xlu1 %v1907_v33  ;;  %v1897_v33 = vshll.u32 %v1896_v38, 16  ;;  %v1882_v13 = vshll.u32 %v1881_v31, 16 }
 0x7f9   : > { %v4394_v62 = vpop.xlane.xlu1 %1934 }
 0x7fa   : > { %vm1936_vm4 = vcmp.eq.f32.partialorder %v1933_v29, %v4394_v62 }
 0x7fb   : > { %v1937_v3 = vsel %vm1936_vm4, %v1932_v2, inf  ;;  %v1911_v2 = vcvt.f32.s32 %v1905_v50 }
 0x7fc   : > { %1938 = vmin.xlane.f32.xlu1 %v1937_v3 }
 0x874   : > { %v1834_v18 = vpop.xlane.xlu0 %1833 }
 0x875   : > { %v1835_v12 = vcvt.f32.s32 %v1834_v18 }
 0x877   : > { %v1838_v56 = vadd.s32 %v1837_v44, %v1835_v12  ;;  %v1912_v12 = vshll.u32 %v1911_v2, 16 }
 0x878   : > { %v1849_v10 = vpop.xlane.xlu1 %1848 }
 0x879   : > { %v1850_v20 = vcvt.f32.s32 %v1849_v10  ;;  %vm1944_vm5 = vcmp.eq.s32.totalorder %v4116_v7, %v1838_v56  ;;  %v1941_v56 = vcvt.f32.s32 %v4394_v62 }
 0x87a   : > { %v4399_v42 = vsel %vm1944_vm5, -inf, %v4278_v19  ;;  %v4402_v23 = vsel %vm1944_vm5, 1.0, %v4280_v27 }
 0x87b   : > { %v1853_v29 = vadd.s32 %v1852_v28, %v1850_v20  ;;  %v1968_v26 = vsel %vm1325_vm2, %v4399_v42, -inf }
 0x87c   : > { %1969 = vmax.xlane.f32.xlu0 %v1968_v26  ;;  %v1864_v36 = vpop.xlane.xlu0 %1863 }
 0x87d   : > { %vm1945_vm14 = vcmp.eq.s32.totalorder %v4116_v7, %v1853_v29  ;;  %v1865_v59 = vcvt.f32.s32 %v1864_v36  ;;  %v1942_v36 = vshll.u32 %v1941_v56, 16 }
 0x87e   : > { %v4408_v24 = vsel %vm1945_vm14, -inf, %v4290_v54  ;;  %v4411_v19 = vsel %vm1945_vm14, 1.0, %v4292_v30 }
 0x87f   : > { %v1971_v27 = vsel %vm1325_vm2, %v4408_v24, -inf  ;;  %v1868_v40 = vadd.s32 %v1867_v34, %v1865_v59 }
 0x880   : > { %1972 = vmax.xlane.f32.xlu1 %v1971_v27  ;;  %v1894_v32 = vpop.xlane.xlu0 %1893 }
 0x881   : > { %v1895_v3 = vcvt.f32.s32 %v1894_v32  ;;  %v1879_v8 = vpop.xlane.xlu1 %1878  ;;  %vm1946_vm15 = vcmp.eq.s32.totalorder %v4116_v7, %v1868_v40 }
 0x882   : > { %v1880_v54 = vcvt.f32.s32 %v1879_v8  ;;  %v4417_v18 = vsel %vm1946_vm15, -inf, %v4303_v63  ;;  %v4420_v30 = vsel %vm1946_vm15, 1.0, %v4305_v25 }
 0x883   : > { %v1898_v43 = vadd.s32 %v1897_v33, %v1895_v3  ;;  %v1974_v44 = vsel %vm1325_vm2, %v4417_v18, -inf }
 0x884   : > { %v1883_v49 = vadd.s32 %v1882_v13, %v1880_v54  ;;  %1975 = vmax.xlane.f32.xlu0 %v1974_v44  ;;  %v1924_v50 = vpop.xlane.xlu0 %1923 }
 0x885   : > { %v1925_v10 = vcvt.f32.s32 %v1924_v50  ;;  %v1909_v28 = vpop.xlane.xlu1 %1908  ;;  %vm1948_vm6 = vcmp.eq.s32.totalorder %v4116_v7, %v1898_v43 }
 0x886   : > { %v1910_v63 = vcvt.f32.s32 %v1909_v28  ;;  %v4427_v14 = vsel %vm1948_vm6, -inf, %v4320_v17  ;;  %v4430_v25 = vsel %vm1948_vm6, 1.0, %v4322_v45  ;;  %vm1947_vm7 = vcmp.eq.s32.totalorder %v4116_v7, %v1883_v49 }
 0x887   : > { %v1928_v20 = vadd.s32 %v1927_v21, %v1925_v10  ;;  %v1980_v29 = vsel %vm1325_vm2, %v4427_v14, -inf  ;;  %v4436_v26 = vsel %vm1947_vm7, -inf, %v4328_v9  ;;  %v4439_v62 = vsel %vm1947_vm7, 1.0, %v4330_v0 }
 0x888   : > { %v1913_v34 = vadd.s32 %v1912_v12, %v1910_v63  ;;  %1981 = vmax.xlane.f32.xlu0 %v1980_v29  ;;  %v1977_v17 = vsel %vm1325_vm2, %v4436_v26, -inf }
 0x889   : > { %1978 = vmax.xlane.f32.xlu1 %v1977_v17  ;;  %v1939_v45 = vpop.xlane.xlu1 %1938  ;;  %vm1950_vm8 = vcmp.eq.s32.totalorder %v4116_v7, %v1928_v20 }
 0x88a   : > { %v1940_v38 = vcvt.f32.s32 %v1939_v45  ;;  %v4445_v59 = vsel %vm1950_vm8, -inf, %v4344_v55  ;;  %v4448_v9 = vsel %vm1950_vm8, 1.0, %v4346_v1  ;;  %vm1949_vm9 = vcmp.eq.s32.totalorder %v4116_v7, %v1913_v34 }
 0x88b   : > { %v1986_v0 = vsel %vm1325_vm2, %v4445_v59, -inf  ;;  %v4454_v31 = vsel %vm1949_vm9, -inf, %v4352_v46  ;;  %v4457_v27 = vsel %vm1949_vm9, 1.0, %v4354_v37 }
 0x88c   : > { %v1943_v40 = vadd.s32 %v1942_v36, %v1940_v38  ;;  %1987 = vmax.xlane.f32.xlu0 %v1986_v0  ;;  %v1983_v55 = vsel %vm1325_vm2, %v4454_v31, -inf }
 0x88d   : > { %1984 = vmax.xlane.f32.xlu1 %v1983_v55 }
 0x88e   : > { %vm1951_vm10 = vcmp.eq.s32.totalorder %v4116_v7, %v1943_v40 }
 0x88f   : > { %v4463_v1 = vsel %vm1951_vm10, -inf, %v4364_v4  ;;  %v4466_v22 = vsel %vm1951_vm10, 1.0, %v4366_v48 }
 0x890   : > { %v1989_v46 = vsel %vm1325_vm2, %v4463_v1, -inf }
 0x891   : > { %1990 = vmax.xlane.f32.xlu1 %v1989_v46 }
 0x909   : > { %v1970_v37 = vpop.xlane.xlu0 %1969 }
 0x90a   : > { %vm1992_vm3 = vcmp.eq.f32.partialorder %v4399_v42, %v1970_v37 }
 0x90b   : > { %v2000_v32 = vsel %vm1992_vm3, %v4116_v7, 8 }
 0x90c   : > { %v2008_v33 = vsel %vm1325_vm2, %v2000_v32, 2147483647 }
 0x90d   : > { %v1973_v2 = vpop.xlane.xlu1 %1972  ;;  %v2010_v3 = vshra.s32 %v2008_v33, 16 }
 0x90e   : > { %vm1993_vm11 = vcmp.eq.f32.partialorder %v4408_v24, %v1973_v2 }
 0x90f   : > { %v2001_v4 = vsel %vm1993_vm11, %v4116_v7, 8  ;;  %v2012_v8 = vcvt.s32.f32 %v2010_v3 }
 0x910   : > { %v2023_v48 = vsel %vm1325_vm2, %v2001_v4, 2147483647 }
 0x911   : > { %2013 = vmin.xlane.f32.xlu0 %v2012_v8  ;;  %v2025_v13 = vshra.s32 %v2023_v48, 16  ;;  %v1976_v54 = vpop.xlane.xlu0 %1975 }
 0x912   : > { %vm1994_vm12 = vcmp.eq.f32.partialorder %v4417_v18, %v1976_v54 }
 0x913   : > { %v2027_v43 = vcvt.s32.f32 %v2025_v13  ;;  %v2002_v44 = vsel %vm1994_vm12, %v4116_v7, 8 }
 0x914   : > { %v2038_v21 = vsel %vm1325_vm2, %v2002_v44, 2147483647 }
 0x915   : > { %2028 = vmin.xlane.f32.xlu1 %v2027_v43  ;;  %v2040_v49 = vshra.s32 %v2038_v21, 16  ;;  %v1982_v50 = vpop.xlane.xlu0 %1981 }
 0x916   : > { %vm1996_vm13 = vcmp.eq.f32.partialorder %v4427_v14, %v1982_v50  ;;  %v1979_v12 = vpop.xlane.xlu1 %1978  ;;  %v2009_v50 = vand.u32 65535, %v2008_v33 }
 0x917   : > { %v2004_v56 = vsel %vm1996_vm13, %v4116_v7, 8  ;;  %vm1995_vm4 = vcmp.eq.f32.partialorder %v4436_v26, %v1979_v12  ;;  %v2042_v10 = vcvt.s32.f32 %v2040_v49  ;;  %v2024_v12 = vand.u32 65535, %v2023_v48 }
 0x918   : > { %v2068_v28 = vsel %vm1325_vm2, %v2004_v56, 2147483647  ;;  %v2003_v63 = vsel %vm1995_vm4, %v4116_v7, 8 }
 0x919   : > { %v2070_v20 = vshra.s32 %v2068_v28, 16  ;;  %v2053_v29 = vsel %vm1325_vm2, %v2003_v63, 2147483647  ;;  %2043 = vmin.xlane.f32.xlu0 %v2042_v10  ;;  %v1988_v34 = vpop.xlane.xlu0 %1987  ;;  %v2011_v63 = vcvt.s32.f32 %v2009_v50 }
 0x91a   : > { %v2055_v17 = vshra.s32 %v2053_v29, 16  ;;  %vm1998_vm5 = vcmp.eq.f32.partialorder %v4445_v59, %v1988_v34  ;;  %v1985_v36 = vpop.xlane.xlu1 %1984 }
 0x91b   : > { %v2006_v45 = vsel %vm1998_vm5, %v4116_v7, 8  ;;  %vm1997_vm14 = vcmp.eq.f32.partialorder %v4454_v31, %v1985_v36  ;;  %v2072_v38 = vcvt.s32.f32 %v2070_v20  ;;  %v2039_v36 = vand.u32 65535, %v2038_v21 }
 0x91c   : > { %v2098_v0 = vsel %vm1325_vm2, %v2006_v45, 2147483647  ;;  %v2005_v40 = vsel %vm1997_vm14, %v4116_v7, 8  ;;  %v2057_v55 = vcvt.s32.f32 %v2055_v17  ;;  %v2026_v17 = vcvt.s32.f32 %v2024_v12 }
 0x91d   : > { %v2100_v46 = vshra.s32 %v2098_v0, 16  ;;  %v2083_v37 = vsel %vm1325_vm2, %v2005_v40, 2147483647  ;;  %2073 = vmin.xlane.f32.xlu0 %v2072_v38  ;;  %v2069_v40 = vand.u32 65535, %v2068_v28  ;;  %v2099_v33 = vand.u32 65535, %v2098_v0 }
 0x91e   : > { %v2085_v32 = vshra.s32 %v2083_v37, 16  ;;  %2058 = vmin.xlane.f32.xlu1 %v2057_v55  ;;  %v1991_v2 = vpop.xlane.xlu1 %1990  ;;  %v2084_v50 = vand.u32 65535, %v2083_v37 }
 0x91f   : > { %vm1999_vm15 = vcmp.eq.f32.partialorder %v4463_v1, %v1991_v2  ;;  %v2102_v3 = vcvt.s32.f32 %v2100_v46  ;;  %v2054_v2 = vand.u32 65535, %v2053_v29  ;;  %v2101_v28 = vcvt.s32.f32 %v2099_v33 }
 0x920   : > { %v2007_v4 = vsel %vm1999_vm15, %v4116_v7, 8  ;;  %v2087_v13 = vcvt.s32.f32 %v2085_v32  ;;  %v2041_v32 = vcvt.s32.f32 %v2039_v36 }
 0x921   : > { %v2113_v54 = vsel %vm1325_vm2, %v2007_v4, 2147483647  ;;  %2103 = vmin.xlane.f32.xlu0 %v2102_v3 }
 0x922   : > { %v2115_v44 = vshra.s32 %v2113_v54, 16  ;;  %2088 = vmin.xlane.f32.xlu1 %v2087_v13 }
 0x924   : > { %v2117_v49 = vcvt.s32.f32 %v2115_v44  ;;  %v2071_v44 = vcvt.s32.f32 %v2069_v40 }
 0x926   : > { %2118 = vmin.xlane.f32.xlu1 %v2117_v49 }
 0x99e   : > { %v2014_v56 = vpop.xlane.xlu0 %2013 }
 0x99f   : > { %vm2015_vm6 = vcmp.eq.f32.partialorder %v2012_v8, %v2014_v56  ;;  %v2020_v36 = vcvt.f32.s32 %v2014_v56 }
 0x9a0   : > { %v2016_v20 = vsel %vm2015_vm6, %v2011_v63, inf  ;;  %v2056_v63 = vcvt.s32.f32 %v2054_v2 }
 0x9a1   : > { %2017 = vmin.xlane.f32.xlu0 %v2016_v20  ;;  %v2114_v20 = vand.u32 65535, %v2113_v54  ;;  %v2021_v40 = vshll.u32 %v2020_v36, 16 }
 0x9a2   : > { %v2029_v34 = vpop.xlane.xlu1 %2028 }
 0x9a3   : > { %vm2030_vm7 = vcmp.eq.f32.partialorder %v2027_v43, %v2029_v34 }
 0x9a4   : > { %v2031_v45 = vsel %vm2030_vm7, %v2026_v17, inf }
 0x9a5   : > { %2032 = vmin.xlane.f32.xlu1 %v2031_v45 }
 0x9a6   : > { %v2044_v46 = vpop.xlane.xlu0 %2043 }
 0x9a7   : > { %vm2045_vm8 = vcmp.eq.f32.partialorder %v2042_v10, %v2044_v46  ;;  %v2086_v10 = vcvt.s32.f32 %v2084_v50 }
 0x9a8   : > { %v2046_v4 = vsel %vm2045_vm8, %v2041_v32, inf  ;;  %v2035_v32 = vcvt.f32.s32 %v2029_v34 }
 0x9a9   : > { %2047 = vmin.xlane.f32.xlu0 %v2046_v4 }
 0x9aa   : > { %v2074_v48 = vpop.xlane.xlu0 %2073  ;;  %v2036_v4 = vshll.u32 %v2035_v32, 16 }
 0x9ab   : > { %vm2075_vm9 = vcmp.eq.f32.partialorder %v2072_v38, %v2074_v48  ;;  %v2059_v8 = vpop.xlane.xlu1 %2058  ;;  %v2116_v38 = vcvt.s32.f32 %v2114_v20 }
 0x9ac   : > { %vm2060_vm10 = vcmp.eq.f32.partialorder %v2057_v55, %v2059_v8  ;;  %v2076_v12 = vsel %vm2075_vm9, %v2071_v44, inf }
 0x9ad   : > { %2077 = vmin.xlane.f32.xlu0 %v2076_v12  ;;  %v2061_v43 = vsel %vm2060_vm10, %v2056_v63, inf  ;;  %v2080_v12 = vcvt.f32.s32 %v2074_v48 }
 0x9ae   : > { %2062 = vmin.xlane.f32.xlu1 %v2061_v43  ;;  %v2104_v21 = vpop.xlane.xlu0 %2103 }
 0x9af   : > { %vm2105_vm3 = vcmp.eq.f32.partialorder %v2102_v3, %v2104_v21  ;;  %v2089_v29 = vpop.xlane.xlu1 %2088 }
 0x9b0   : > { %vm2090_vm11 = vcmp.eq.f32.partialorder %v2087_v13, %v2089_v29  ;;  %v2106_v17 = vsel %vm2105_vm3, %v2101_v28, inf  ;;  %v2050_v13 = vcvt.f32.s32 %v2044_v46  ;;  %v2065_v28 = vcvt.f32.s32 %v2059_v8 }
 0x9b1   : > { %2107 = vmin.xlane.f32.xlu0 %v2106_v17  ;;  %v2091_v0 = vsel %vm2090_vm11, %v2086_v10, inf  ;;  %v2110_v10 = vcvt.f32.s32 %v2104_v21 }
 0x9b2   : > { %2092 = vmin.xlane.f32.xlu1 %v2091_v0  ;;  %v2051_v34 = vshll.u32 %v2050_v13, 16  ;;  %v2081_v0 = vshll.u32 %v2080_v12, 16  ;;  %v2066_v48 = vshll.u32 %v2065_v28, 16 }
 0x9b3   : > { %v4494_v37 = vpop.xlane.xlu1 %2118  ;;  %v2111_v32 = vshll.u32 %v2110_v10, 16 }
 0x9b4   : > { %vm2120_vm12 = vcmp.eq.f32.partialorder %v2117_v49, %v4494_v37 }
 0x9b5   : > { %v2121_v55 = vsel %vm2120_vm12, %v2116_v38, inf  ;;  %v2095_v38 = vcvt.f32.s32 %v2089_v29  ;;  %v2125_v29 = vcvt.f32.s32 %v4494_v37 }
 0x9b6   : > { %2122 = vmin.xlane.f32.xlu1 %v2121_v55 }
 0xa2e   : > { %v2018_v45 = vpop.xlane.xlu0 %2017 }
 0xa2f   : > { %v2019_v54 = vcvt.f32.s32 %v2018_v45 }
 0xa31   : > { %v2022_v3 = vadd.s32 %v2021_v40, %v2019_v54 }
 0xa32   : > { %v2033_v2 = vpop.xlane.xlu1 %2032 }
 0xa33   : > { %v2034_v33 = vcvt.f32.s32 %v2033_v2  ;;  %vm2128_vm13 = vcmp.eq.s32.totalorder %v4116_v7, %v2022_v3  ;;  %v2096_v3 = vshll.u32 %v2095_v38, 16 }
 0xa34   : > { %v4499_v44 = vsel %vm2128_vm13, -inf, %v4399_v42  ;;  %v4502_v50 = vsel %vm2128_vm13, 1.0, %v4402_v23 }
 0xa35   : > { %v2037_v49 = vadd.s32 %v2036_v4, %v2034_v33  ;;  %v2152_v56 = vsel %vm1325_vm2, %v4499_v44, -inf }
 0xa36   : > { %2153 = vmax.xlane.f32.xlu0 %v2152_v56  ;;  %v2048_v63 = vpop.xlane.xlu0 %2047 }
 0xa37   : > { %vm2129_vm4 = vcmp.eq.s32.totalorder %v4116_v7, %v2037_v49  ;;  %v2049_v46 = vcvt.f32.s32 %v2048_v63 }
 0xa38   : > { %v4508_v43 = vsel %vm2129_vm4, -inf, %v4408_v24  ;;  %v4511_v42 = vsel %vm2129_vm4, 1.0, %v4411_v19 }
 0xa39   : > { %v2155_v23 = vsel %vm1325_vm2, %v4508_v43, -inf  ;;  %v2052_v20 = vadd.s32 %v2051_v34, %v2049_v46 }
 0xa3a   : > { %2156 = vmax.xlane.f32.xlu1 %v2155_v23  ;;  %v2078_v17 = vpop.xlane.xlu0 %2077 }
 0xa3b   : > { %v2079_v55 = vcvt.f32.s32 %v2078_v17  ;;  %v2063_v36 = vpop.xlane.xlu1 %2062  ;;  %vm2130_vm5 = vcmp.eq.s32.totalorder %v4116_v7, %v2052_v20 }
 0xa3c   : > { %v2064_v24 = vcvt.f32.s32 %v2063_v36  ;;  %v2138_v45 = vsel %vm2130_vm5, -inf, %v4417_v18  ;;  %v4518_v19 = vsel %vm2130_vm5, 1.0, %v4420_v30 }
 0xa3d   : > { %v2082_v8 = vadd.s32 %v2081_v0, %v2079_v55  ;;  %v2158_v40 = vsel %vm1325_vm2, %v2138_v45, -inf }
 0xa3e   : > { %v2067_v54 = vadd.s32 %v2066_v48, %v2064_v24  ;;  %2159 = vmax.xlane.f32.xlu0 %v2158_v40  ;;  %v2108_v21 = vpop.xlane.xlu0 %2107 }
 0xa3f   : > { %v2109_v2 = vcvt.f32.s32 %v2108_v21  ;;  %v2093_v4 = vpop.xlane.xlu1 %2092  ;;  %vm2132_vm14 = vcmp.eq.s32.totalorder %v4116_v7, %v2082_v8 }
 0xa40   : > { %v2094_v13 = vcvt.f32.s32 %v2093_v4  ;;  %v2140_v18 = vsel %vm2132_vm14, -inf, %v4427_v14  ;;  %v4525_v30 = vsel %vm2132_vm14, 1.0, %v4430_v25  ;;  %vm2131_vm15 = vcmp.eq.s32.totalorder %v4116_v7, %v2067_v54 }
 0xa41   : > { %v2112_v33 = vadd.s32 %v2111_v32, %v2109_v2  ;;  %v2164_v49 = vsel %vm1325_vm2, %v2140_v18, -inf  ;;  %v4530_v56 = vsel %vm2131_vm15, -inf, %v4436_v26  ;;  %v4533_v37 = vsel %vm2131_vm15, 1.0, %v4439_v62 }
 0xa42   : > { %v2097_v34 = vadd.s32 %v2096_v3, %v2094_v13  ;;  %2165 = vmax.xlane.f32.xlu0 %v2164_v49  ;;  %v2161_v63 = vsel %vm1325_vm2, %v4530_v56, -inf  ;;  %v2126_v14 = vshll.u32 %v2125_v29, 16 }
 0xa43   : > { %2162 = vmax.xlane.f32.xlu1 %v2161_v63  ;;  %v2123_v25 = vpop.xlane.xlu1 %2122  ;;  %vm2134_vm6 = vcmp.eq.s32.totalorder %v4116_v7, %v2112_v33 }
 0xa44   : > { %v2124_v12 = vcvt.f32.s32 %v2123_v25  ;;  %v2142_v46 = vsel %vm2134_vm6, -inf, %v4445_v59  ;;  %v4540_v28 = vsel %vm2134_vm6, 1.0, %v4448_v9  ;;  %vm2133_vm7 = vcmp.eq.s32.totalorder %v4116_v7, %v2097_v34 }
 0xa45   : > { %v2170_v26 = vsel %vm1325_vm2, %v2142_v46, -inf  ;;  %v2141_v62 = vsel %vm2133_vm7, -inf, %v4454_v31  ;;  %v4546_v23 = vsel %vm2133_vm7, 1.0, %v4457_v27 }
 0xa46   : > { %v2127_v20 = vadd.s32 %v2126_v14, %v2124_v12  ;;  %2171 = vmax.xlane.f32.xlu0 %v2170_v26  ;;  %v2167_v10 = vsel %vm1325_vm2, %v2141_v62, -inf }
 0xa47   : > { %2168 = vmax.xlane.f32.xlu1 %v2167_v10 }
 0xa48   : > { %vm2135_vm8 = vcmp.eq.s32.totalorder %v4116_v7, %v2127_v20 }
 0xa49   : > { %v2143_v59 = vsel %vm2135_vm8, -inf, %v4463_v1  ;;  %v4552_v9 = vsel %vm2135_vm8, 1.0, %v4466_v22 }
 0xa4a   : > { %v2173_v17 = vsel %vm1325_vm2, %v2143_v59, -inf }
 0xa4b   : > { %2174 = vmax.xlane.f32.xlu1 %v2173_v17 }
 0xac3   : > { %v2154_v0 = vpop.xlane.xlu0 %2153 }
 0xac4   : > { %vm2176_vm9 = vcmp.eq.f32.partialorder %v4499_v44, %v2154_v0 }
 0xac5   : > { %v2184_v31 = vsel %vm2176_vm9, %v4116_v7, 8 }
 0xac6   : > { %v4558_v27 = vsel %vm1325_vm2, %v2184_v31, 2147483647 }
 0xac7   : > { %v2194_v38 = vshra.s32 %v4558_v27, 16  ;;  %v2157_v55 = vpop.xlane.xlu1 %2156  ;;  %v2193_v10 = vand.u32 65535, %v4558_v27 }
 0xac8   : > { %vm2177_vm10 = vcmp.eq.f32.partialorder %v4508_v43, %v2157_v55 }
 0xac9   : > { %v2185_v1 = vsel %vm2177_vm10, %v4116_v7, 8  ;;  %v2196_v22 = vcvt.s32.f32 %v2194_v38  ;;  %v2195_v0 = vcvt.s32.f32 %v2193_v10 }
 0xaca   : > { %v2207_v36 = vsel %vm1325_vm2, %v2185_v1, 2147483647 }
 0xacb   : > { %v2209_v48 = vshra.s32 %v2207_v36, 16  ;;  %2197 = vmin.xlane.f32.xlu0 %v2196_v22  ;;  %v2160_v24 = vpop.xlane.xlu0 %2159 }
 0xacc   : > { %vm2178_vm3 = vcmp.eq.f32.partialorder %v2138_v45, %v2160_v24 }
 0xacd   : > { %v2211_v44 = vcvt.s32.f32 %v2209_v48  ;;  %v2186_v8 = vsel %vm2178_vm3, %v4116_v7, 8 }
 0xace   : > { %v4567_v54 = vsel %vm1325_vm2, %v2186_v8, 2147483647 }
 0xacf   : > { %2212 = vmin.xlane.f32.xlu1 %v2211_v44  ;;  %v2166_v40 = vpop.xlane.xlu0 %2165  ;;  %v2224_v3 = vshra.s32 %v4567_v54, 16 }
 0xad0   : > { %vm2180_vm11 = vcmp.eq.f32.partialorder %v2140_v18, %v2166_v40  ;;  %v2163_v45 = vpop.xlane.xlu1 %2162 }
 0xad1   : > { %v2188_v32 = vsel %vm2180_vm11, %v4116_v7, 8  ;;  %v4571_v2 = vcvt.s32.f32 %v2224_v3  ;;  %vm2179_vm12 = vcmp.eq.f32.partialorder %v4530_v56, %v2163_v45  ;;  %vm2339_vm11 = vcmask 64512  }
 0xad2   : > { %v2252_v43 = vsel %vm1325_vm2, %v2188_v32, 2147483647  ;;  %v2187_v18 = vsel %vm2179_vm12, %v4116_v7, 8 }
 0xad3   : > { %v2254_v21 = vshra.s32 %v2252_v43, 16  ;;  %v2172_v13 = vpop.xlane.xlu0 %2171  ;;  %v2253_v24 = vand.u32 65535, %v2252_v43 }
 0xad4   : > { %v2169_v4 = vpop.xlane.xlu1 %2168  ;;  %vm2182_vm4 = vcmp.eq.f32.partialorder %v2142_v46, %v2172_v13 }
 0xad5   : > { %v2256_v29 = vcvt.s32.f32 %v2254_v21  ;;  %vm2181_vm13 = vcmp.eq.f32.partialorder %v2141_v62, %v2169_v4  ;;  %v2190_v49 = vsel %vm2182_vm4, %v4116_v7, 8  ;;  %v2255_v27 = vcvt.s32.f32 %v2253_v24 }
 0xad6   : > { %v2282_v34 = vsel %vm1325_vm2, %v2190_v49, 2147483647 }
 0xad7   : > { %2257 = vmin.xlane.f32.xlu0 %v2256_v29  ;;  %v2284_v25 = vshra.s32 %v2282_v34, 16  ;;  %v2283_v45 = vand.u32 65535, %v2282_v34 }
 0xad8   : > { %v2175_v33 = vpop.xlane.xlu1 %2174 }
 0xad9   : > { %vm2183_vm5 = vcmp.eq.f32.partialorder %v2143_v59, %v2175_v33  ;;  %v2286_v62 = vcvt.s32.f32 %v2284_v25  ;;  %v2208_v59 = vand.u32 65535, %v2207_v36 }
 0xada   : > { %v2191_v56 = vsel %vm2183_vm5, %v4116_v7, 8 }
 0xadb   : > { %2227 = vmin.xlane.f32.xlu0 %v4571_v2  ;;  %v4591_v12 = vsel %vm1325_vm2, %v2191_v56, 2147483647  ;;  %v2210_v55 = vcvt.s32.f32 %v2208_v59 }
 0xadc   : > { %v2299_v46 = vshra.s32 %v4591_v12, 16 }
 0xade   : > { %v2301_v20 = vcvt.s32.f32 %v2299_v46 }
 0xae0   : > { %2413 = vrot.lane.b32.xlu1 %v3989_v53, %s3708_s27  ;;  %v2237_v53 = vsel %vm1325_vm2, %v2187_v18, 2147483647 }
 0xae4   : > { %2489 = vrot.lane.b32.xlu1 %v3994_v57, %s3708_s27  ;;  %v2189_v57 = vsel %vm2181_vm13, %v4116_v7, 8 }
 0xae8   : > { %2565 = vrot.lane.b32.xlu1 %v4016_v6, %s3708_s27  ;;  %v2239_v6 = vshra.s32 %v2237_v53, 16 }
 0xaea   : > { %v2241_v14 = vcvt.s32.f32 %v2239_v6 }
 0xaf1   : > { %2336 = vrot.lane.b32.xlu0 %v3975_v39, %s3708_s27  ;;  %v2267_v39 = vsel %vm1325_vm2, %v2189_v57, 2147483647 }
 0xaf2   : > { %v2269_v63 = vshra.s32 %v2267_v39, 16  ;;  %v2268_v21 = vand.u32 65535, %v2267_v39 }
 0xaf4   : > { %v2271_v26 = vcvt.s32.f32 %v2269_v63  ;;  %v2270_v18 = vcvt.s32.f32 %v2268_v21 }
 0xb0c   : > { %2242 = vmin.xlane.f32.xlu1 %v2241_v14 }
 0xb10   : > { %2272 = vmin.xlane.f32.xlu1 %v2271_v26  ;;  %2287 = vmin.xlane.f32.xlu0 %v2286_v62 }
 0xb14   : > { %2302 = vmin.xlane.f32.xlu1 %v2301_v20 }
 0xb25   : > { %2717 = vrot.lane.b32.xlu1 %v4034_v11, %s3708_s27 }
 0xb26   : > { %2641 = vrot.lane.b32.xlu0 %v3997_v58, %s3708_s27  ;;  %v2223_v58 = vand.u32 65535, %v4567_v54  ;;  %v2238_v54 = vand.u32 65535, %v2237_v53  ;;  %v2285_v53 = vcvt.s32.f32 %v2283_v45 }
 0xb28   : > { %v2225_v8 = vcvt.s32.f32 %v2223_v58 }
 0xb58   : > { %v2198_v17 = vpop.xlane.xlu0 %2197 }
 0xb59   : > { %vm2199_vm2 = vcmp.eq.f32.partialorder %v2196_v22, %v2198_v17  ;;  %v2204_v63 = vcvt.f32.s32 %v2198_v17 }
 0xb5a   : > { %v2200_v31 = vsel %vm2199_vm2, %v2195_v0, inf }
 0xb5b   : > { %2201 = vmin.xlane.f32.xlu0 %v2200_v31 }
 0xb5c   : > { %v2213_v38 = vpop.xlane.xlu1 %2212 }
 0xb5d   : > { %vm2214_vm14 = vcmp.eq.f32.partialorder %v2211_v44, %v2213_v38  ;;  %v2219_v46 = vcvt.f32.s32 %v2213_v38 }
 0xb5e   : > { %v2215_v1 = vsel %vm2214_vm14, %v2210_v55, inf }
 0xb5f   : > { %2216 = vmin.xlane.f32.xlu1 %v2215_v1  ;;  %v2220_v59 = vshll.u32 %v2219_v46, 16  ;;  %v3569_v46 = vld [vmem:[%s4769_s6] sm:$0xf] }
 0xb60   : > { %v2414_v48 = vpop.permute.xlu1 %2413 }
 0xb61   : > { %3408 = vmatpush3.msra.mxu0 %v2414_v48 }
 0xb62   : > { %3417 = vmatprep.subr.mxu0 %v4800_v16 }
 0xb64   : > { %v4601_v11 = vpop.xlane.xlu0 %2257  ;;  %v2490_v32 = vpop.permute.xlu1 %2489 }
 0xb65   : > { %vm2259_vm15 = vcmp.eq.f32.partialorder %v2256_v29, %v4601_v11  ;;  %v2240_v29 = vcvt.s32.f32 %v2238_v54  ;;  %v2264_v17 = vcvt.f32.s32 %v4601_v11 }
 0xb66   : > { %v2260_v22 = vsel %vm2259_vm15, %v2255_v27, inf }
 0xb67   : > { %2261 = vmin.xlane.f32.xlu0 %v2260_v22 }
 0xb68   : > { %v4604_v36 = vpop.xlane.xlu0 %2227  ;;  %v2566_v43 = vpop.permute.xlu1 %2565 }
 0xb69   : > { %vm2229_vm6 = vcmp.eq.f32.partialorder %v4571_v2, %v4604_v36  ;;  %v2298_v2 = vand.u32 65535, %v4591_v12  ;;  %v2205_v12 = vshll.u32 %v2204_v63, 16  ;;  %v2234_v55 = vcvt.f32.s32 %v4604_v36 }
 0xb6a   : > { %v2230_v44 = vsel %vm2229_vm6, %v2225_v8, inf  ;;  %v4801_v63 = vmov 0.0|0.0   ;;  %vm3029_vm6 = vcmask 1041409  }
 0xb6b   : > { %2231 = vmin.xlane.f32.xlu0 %v2230_v44  ;;  %v2300_v39 = vcvt.s32.f32 %v2298_v2  ;;  %v2235_v24 = vshll.u32 %v2234_v55, 16 }
 0xb6c   : > { %v2337_v40 = vpop.permute.xlu0 %2336 }
 0xb6d   : > { %3403 = vmatpush3.msra.mxu1 %v2337_v40 }
 0xb6e   : > { %3412 = vmatprep.subr.mxu1 %v4800_v16 }
 0xb99   : > { %v4609_v3 = vpop.xlane.xlu1 %2242 }
 0xb9a   : > { %vm2244_vm7 = vcmp.eq.f32.partialorder %v2241_v14, %v4609_v3 }
 0xb9b   : > { %v2245_v4 = vsel %vm2244_vm7, %v2240_v29, inf  ;;  %vm3031_vm7 = vcmask 1042434  }
 0xb9c   : > { %2246 = vmin.xlane.f32.xlu1 %v2245_v4 }
 0xb9d   : > { %v4613_v13 = vpop.xlane.xlu1 %2272  ;;  %v4615_v33 = vpop.xlane.xlu0 %2287 }
 0xb9e   : > { %vm2274_vm8 = vcmp.eq.f32.partialorder %v2271_v26, %v4613_v13  ;;  %vm2289_vm9 = vcmp.eq.f32.partialorder %v2286_v62, %v4615_v33  ;;  %v2294_v40 = vcvt.f32.s32 %v4615_v33 }
 0xb9f   : > { %v2275_v57 = vsel %vm2274_vm8, %v2270_v18, inf  ;;  %v2290_v49 = vsel %vm2289_vm9, %v2285_v53, inf  ;;  %vm3033_vm8 = vcmask 1043459   ;;  %vm3035_vm9 = vcmask 1044484  }
 0xba0   : > { %2276 = vmin.xlane.f32.xlu1 %v2275_v57  ;;  %2291 = vmin.xlane.f32.xlu0 %v2290_v49  ;;  %v2295_v45 = vshll.u32 %v2294_v40, 16 }
 0xba1   : > { %v4619_v6 = vpop.xlane.xlu1 %2302  ;;  %v2642_v56 = vpop.permute.xlu0 %2641 }
 0xba2   : > { %vm2304_vm10 = vcmp.eq.f32.partialorder %v2301_v20, %v4619_v6 }
 0xba3   : > { %v2305_v34 = vsel %vm2304_vm10, %v2300_v39, inf  ;;  %vm3037_vm10 = vcmask 1045509  }
 0xba4   : > { %2306 = vmin.xlane.f32.xlu1 %v2305_v34 }
 0xba5   : > { %v4626_v14 = vpop.permute.xlu1 %2717 }
 0xbb5   : > { %2869 = vrot.lane.b32.xlu1 %v4048_v15, %s3708_s27 }
 0xbb6   : > { %2793 = vrot.lane.b32.xlu0 %v4011_v5, %s3708_s27 }
 0xbe8   : > { %v2202_v25 = vpop.xlane.xlu0 %2201 }
 0xbe9   : > { %v2203_v26 = vcvt.f32.s32 %v2202_v25 }
 0xbeb   : > { %v2206_v62 = vadd.s32 %v2205_v12, %v2203_v26 }
 0xbec   : > { %v2217_v10 = vpop.xlane.xlu1 %2216 }
 0xbed   : > { %vm2312_vm3 = vcmp.eq.s32.totalorder %v4116_v7, %v2206_v62  ;;  %v2218_v20 = vcvt.f32.s32 %v2217_v10 }
 0xbee   : > { %v2320_v0 = vsel %vm2312_vm3, 1.0, %v4502_v50  ;;  %vm3039_vm3 = vcmask 1046534  }
 0xbef   : > { %v2328_v15 = vmul.f32 %v2320_v0, %v4083_v35  ;;  %v2221_v5 = vadd.s32 %v2220_v59, %v2218_v20  ;;  %v2265_v35 = vshll.u32 %v2264_v17, 16 }
 0xbf1   : > { %vm2313_vm12 = vcmp.eq.s32.totalorder %v4116_v7, %v2221_v5  ;;  %3405 = vmatmul.mubr.msk.f32.vlgmr.msra.gmra.mrb[12].mxu1 %vm2339_vm11, %v2328_v15 }
 0xbf2   : > { %v2321_v31 = vsel %vm2313_vm12, 1.0, %v4511_v42  ;;  %3413 = vmatpush3.msra.mxu1 %v2490_v32  ;;  %3414 = vmatprep.mubr.msk.f32.mxu1 %vm3705_vm0, %v4800_v16  ;;  %vm3115_vm12 = vcmask 130048  }
 0xbf3   : > { %v2329_v38 = vmul.f32 %v2321_v31, %v4087_v41  ;;  %3422 = vmatprep.subr.mxu1 %v4800_v16 }
 0xbf4   : > { %v2262_v50 = vpop.xlane.xlu0 %2261 }
 0xbf5   : > { %3410 = vmatmul.mubr.msk.f32.vlgmr.msra.gmra.mrb[14].mxu0 %vm2339_vm11, %v2329_v38  ;;  %v2263_v1 = vcvt.f32.s32 %v2262_v50 }
 0xbf6   : > { %3418 = vmatpush3.msra.mxu0 %v2566_v43  ;;  %3419 = vmatprep.mubr.msk.f32.mxu0 %vm3705_vm0, %v4800_v16 }
 0xbf7   : > { %3427 = vmatprep.subr.mxu0 %v4800_v16  ;;  %v2266_v42 = vadd.s32 %v2265_v35, %v2263_v1 }
 0xbf8   : > { %v2232_v48 = vpop.xlane.xlu0 %2231 }
 0xbf9   : > { %vm2316_vm13 = vcmp.eq.s32.totalorder %v4116_v7, %v2266_v42  ;;  %v2233_v41 = vcvt.f32.s32 %v2232_v48 }
 0xbfa   : > { %v2324_v58 = vsel %vm2316_vm13, 1.0, %v4525_v30  ;;  %v2249_v30 = vcvt.f32.s32 %v4609_v3 }
 0xbfb   : > { %v2236_v11 = vadd.s32 %v2235_v24, %v2233_v41  ;;  %v2332_v36 = vmul.f32 %v2324_v58, %v4095_v51  ;;  %v2309_v51 = vcvt.f32.s32 %v4619_v6 }
 0xbfc   : > { %v2250_v8 = vshll.u32 %v2249_v30, 16 }
 0xbfd   : > { %vm2314_vm4 = vcmp.eq.s32.totalorder %v4116_v7, %v2236_v11  ;;  %v2310_v57 = vshll.u32 %v2309_v51, 16 }
 0xbfe   : > { %v2322_v27 = vsel %vm2314_vm4, 1.0, %v4518_v19 }
 0xbff   : > { %v2330_v22 = vmul.f32 %v2322_v27, %v4091_v47  ;;  %v2279_v47 = vcvt.f32.s32 %v4613_v13 }
 0xc01   : > { %3415 = vmatmul.mubr.msk.f32.vlgmr.msra.gmra.mrb[14].mxu1 %vm2339_vm11, %v2330_v22  ;;  %v2280_v43 = vshll.u32 %v2279_v47, 16 }
 0xc02   : > { %3423 = vmatpush3.msra.mxu1 %v2642_v56  ;;  %3424 = vmatprep.mubr.msk.f32.mxu1 %vm3705_vm0, %v4800_v16 }
 0xc03   : > { %3432 = vmatprep.subr.mxu1 %v4800_v16 }
 0xc05   : > { %3425 = vmatmul.mubr.msk.f32.vlgmr.msra.gmra.mrb[16].mxu1 %vm2339_vm11, %v2332_v36 }
 0xc06   : > { %3434 = vmatprep.mubr.msk.f32.mxu1 %vm3705_vm0, %v4800_v16 }
 0xc29   : > { %v2247_v19 = vpop.xlane.xlu1 %2246 }
 0xc2a   : > { %v2248_v44 = vcvt.f32.s32 %v2247_v19 }
 0xc2c   : > { %v2251_v32 = vadd.s32 %v2250_v8, %v2248_v44 }
 0xc2d   : > { %v2277_v54 = vpop.xlane.xlu1 %2276  ;;  %v2292_v21 = vpop.xlane.xlu0 %2291 }
 0xc2e   : > { %vm2315_vm5 = vcmp.eq.s32.totalorder %v4116_v7, %v2251_v32  ;;  %v2278_v29 = vcvt.f32.s32 %v2277_v54  ;;  %v2293_v3 = vcvt.f32.s32 %v2292_v21 }
 0xc2f   : > { %v2323_v4 = vsel %vm2315_vm5, 1.0, %v4533_v37 }
 0xc30   : > { %v2331_v2 = vmul.f32 %v2323_v4, %v4097_v52  ;;  %v2281_v18 = vadd.s32 %v2280_v43, %v2278_v29  ;;  %v2296_v13 = vadd.s32 %v2295_v45, %v2293_v3 }
 0xc31   : > { %v2307_v53 = vpop.xlane.xlu1 %2306  ;;  %v2794_v33 = vpop.permute.xlu0 %2793 }
 0xc32   : > { %vm2317_vm2 = vcmp.eq.s32.totalorder %v4116_v7, %v2281_v18  ;;  %v2308_v49 = vcvt.f32.s32 %v2307_v53  ;;  %3420 = vmatmul.mubr.msk.f32.vlgmr.msra.gmra.mrb[16].mxu0 %vm2339_vm11, %v2331_v2  ;;  %vm2318_vm14 = vcmp.eq.s32.totalorder %v4116_v7, %v2296_v13  ;;  %3433 = vmatpush3.msra.mxu1 %v2794_v33 }
 0xc33   : > { %v2325_v6 = vsel %vm2317_vm2, 1.0, %v4546_v23  ;;  %3428 = vmatpush3.msra.mxu0 %v4626_v14  ;;  %v2326_v37 = vsel %vm2318_vm14, 1.0, %v4540_v28  ;;  %3429 = vmatprep.mubr.msk.f32.mxu0 %vm3705_vm0, %v4800_v16  ;;  %v3012_v14 = vld [vmem:[%s4770_s7 + $0x10] sm:$0xff] }
 0xc34   : > { %v2333_v52 = vmul.f32 %v2325_v6, %v4105_v61  ;;  %v2311_v39 = vadd.s32 %v2310_v57, %v2308_v49  ;;  %3437 = vmatprep.subr.mxu0 %v4800_v16  ;;  %v2334_v34 = vmul.f32 %v2326_v37, %v4103_v60  ;;  %3467 = vmatprep.subr.bf16.mxu1 %v4801_v63  ;;  %v4802_v61 = vld [vmem:[#allocation13_spill] sm:$0xff]  ;;  %v3010_v60 = vld [vmem:[%s4770_s7] sm:$0xff] }
 0xc35   : > { %v2870_v56 = vpop.permute.xlu1 %2869 }
 0xc36   : > { %vm2319_vm15 = vcmp.eq.s32.totalorder %v4116_v7, %v2311_v39  ;;  %3430 = vmatmul.mubr.msk.f32.vlgmr.msra.gmra.mrb[18].mxu0 %vm2339_vm11, %v2333_v52  ;;  %3435 = vmatmul.mubr.msk.f32.vlgmr.msra.gmra.mrb[18].mxu1 %vm2339_vm11, %v2334_v34  ;;  %v3011_v7 = vld [vmem:[%s4770_s7 + $0x8] sm:$0xff] }
 0xc37   : > { %v2327_v23 = vsel %vm2319_vm15, 1.0, %v4552_v9  ;;  %3438 = vmatpush3.msra.mxu0 %v2870_v56  ;;  %3439 = vmatprep.mubr.msk.f32.mxu0 %vm3705_vm0, %v4800_v16  ;;  %v3468_v9 = vpack.c.bf16 %v3011_v7, %v3010_v60 }
 0xc38   : > { %v2335_v28 = vmul.f32 %v2327_v23, %v4802_v61  ;;  %3450 = vmatprep.mubr.msk.f32.mxu1 %vm3705_vm0, %v4800_v16  ;;  %v3013_v16 = vld [vmem:[%s4770_s7 + $0x18] sm:$0xff]  ;;  %vm2953_vm0 = vcmask 257024  }
 0xc39   : > { %3469 = vmatpush3.bf16.msra.mxu1 %v3468_v9  ;;  %v3471_v25 = vpack.c.bf16 %v3013_v16, %v3012_v14 }
 0xc3a   : > { %3440 = vmatmul.mubr.msk.f32.vlgmr.msra.gmra.mrb[20].mxu0 %vm2339_vm11, %v2335_v28  ;;  %3470 = vmatprep.subr.bf16.mxu1 %v4801_v63  ;;  %vm3041_vm11 = vcmask 1047559  }
 0xc3d   : > { %3472 = vmatpush3.bf16.msra.mxu1 %v3471_v25 }
 0xcc4   : > { %v2409_v12 = vpop.f32.mrb[12].mxu1 }
 0xcc5   : > { %v2945_v26 = vmul.f32 %v3569_v46, %v2409_v12  ;;  %v3406_v62 = vpop.f32.mrb[13].mxu1 }
 0xcc7   : > { %v2954_v10 = vsel %vm2953_vm0, %v2945_v26, 0.0 }
 0xcc8   : > { %v2955_v59 = vrot.slane %v2954_v10, 4  ;;  %v2485_v20 = vpop.f32.mrb[14].mxu0 }
 0xcc9   : > { %v2946_v0 = vmul.f32 %v3569_v46, %v2485_v20  ;;  %v3411_v15 = vpop.f32.mrb[15].mxu0 }
 0xcca   : > { %v2956_v5 = vadd.f32 %v2955_v59, %v2954_v10 }
 0xccb   : > { %v2961_v17 = vsel %vm2953_vm0, %v2946_v0, 0.0 }
 0xccc   : > { %v2957_v31 = vrot.slane %v2956_v5, 2  ;;  %v2962_v38 = vrot.slane %v2961_v17, 4 }
 0xcce   : > { %v2958_v50 = vadd.f32 %v2957_v31, %v2956_v5  ;;  %v2963_v35 = vadd.f32 %v2962_v38, %v2961_v17 }
 0xcd0   : > { %v2964_v55 = vrot.slane %v2963_v35, 2  ;;  %v2959_v1 = vrot.slane %v2958_v50, 1 }
 0xcd2   : > { %v2965_v42 = vadd.f32 %v2964_v55, %v2963_v35  ;;  %v2960_v41 = vadd.f32 %v2959_v1, %v2958_v50 }
 0xcd4   : > { %v2966_v48 = vrot.slane %v2965_v42, 1  ;;  %v2561_v24 = vpop.f32.mrb[14].mxu1 }
 0xcd5   : > { %v2947_v11 = vmul.f32 %v3569_v46, %v2561_v24  ;;  %v3416_v27 = vpop.f32.mrb[15].mxu1 }
 0xcd6   : > { %v2967_v58 = vadd.f32 %v2966_v48, %v2965_v42 }
 0xcd7   : > { %v2968_v36 = vsel %vm2953_vm0, %v2947_v11, 0.0 }
 0xcd8   : > { %v3030_v22 = vsel %vm3029_vm6, %v2967_v58, %v2960_v41  ;;  %v2969_v30 = vrot.slane %v2968_v36, 4  ;;  %v2713_v19 = vpop.f32.mrb[16].mxu1 }
 0xcd9   : > { %v3426_v8 = vpop.f32.mrb[17].mxu1  ;;  %v2949_v51 = vmul.f32 %v3569_v46, %v2713_v19 }
 0xcda   : > { %v2970_v47 = vadd.f32 %v2969_v30, %v2968_v36 }
 0xcdb   : > { %v2982_v21 = vsel %vm2953_vm0, %v2949_v51, 0.0 }
 0xcdc   : > { %v2971_v44 = vrot.slane %v2970_v47, 2  ;;  %v2983_v29 = vrot.slane %v2982_v21, 4 }
 0xcde   : > { %v2972_v40 = vadd.f32 %v2971_v44, %v2970_v47  ;;  %v2984_v45 = vadd.f32 %v2983_v29, %v2982_v21 }
 0xce0   : > { %v2973_v32 = vrot.slane %v2972_v40, 1  ;;  %v2985_v18 = vrot.slane %v2984_v45, 2 }
 0xce2   : > { %v2974_v54 = vadd.f32 %v2973_v32, %v2972_v40  ;;  %v2986_v34 = vadd.f32 %v2985_v18, %v2984_v45 }
 0xce4   : > { %v3032_v43 = vsel %vm3031_vm7, %v2974_v54, %v3030_v22  ;;  %v2987_v25 = vrot.slane %v2986_v34, 1  ;;  %v3270_v22 = vld [vmem:[%s4771_s8] ss:$0 sm:$0xff] }
 0xce6   : > { %v2988_v17 = vadd.f32 %v2987_v25, %v2986_v34 }
 0xd05   : > { %v2637_v4 = vpop.f32.mrb[16].mxu0 }
 0xd06   : > { %v2948_v3 = vmul.f32 %v3569_v46, %v2637_v4  ;;  %v3421_v2 = vpop.f32.mrb[17].mxu0 }
 0xd08   : > { %v2975_v13 = vsel %vm2953_vm0, %v2948_v3, 0.0 }
 0xd09   : > { %v2976_v53 = vrot.slane %v2975_v13, 4  ;;  %v2789_v57 = vpop.f32.mrb[18].mxu0  ;;  %v2865_v49 = vpop.f32.mrb[18].mxu1 }
 0xd0a   : > { %v2950_v33 = vmul.f32 %v3569_v46, %v2789_v57  ;;  %v3431_v6 = vpop.f32.mrb[19].mxu0  ;;  %v2951_v52 = vmul.f32 %v3569_v46, %v2865_v49  ;;  %v3436_v39 = vpop.f32.mrb[19].mxu1 }
 0xd0b   : > { %v2977_v37 = vadd.f32 %v2976_v53, %v2975_v13 }
 0xd0c   : > { %v2989_v56 = vsel %vm2953_vm0, %v2950_v33, 0.0  ;;  %v2996_v61 = vsel %vm2953_vm0, %v2951_v52, 0.0 }
 0xd0d   : > { %v2978_v63 = vrot.slane %v2977_v37, 2  ;;  %v2990_v23 = vrot.slane %v2989_v56, 4  ;;  %v2941_v28 = vpop.f32.mrb[20].mxu0  ;;  %v2997_v60 = vrot.slane %v2996_v61, 4 }
 0xd0e   : > { %v2952_v7 = vmul.f32 %v3569_v46, %v2941_v28  ;;  %v3441_v9 = vpop.f32.mrb[21].mxu0 }
 0xd0f   : > { %v2979_v14 = vadd.f32 %v2978_v63, %v2977_v37  ;;  %v2991_v16 = vadd.f32 %v2990_v23, %v2989_v56  ;;  %v2998_v12 = vadd.f32 %v2997_v60, %v2996_v61 }
 0xd10   : > { %v3003_v26 = vsel %vm2953_vm0, %v2952_v7, 0.0 }
 0xd11   : > { %v2980_v62 = vrot.slane %v2979_v14, 1  ;;  %v2992_v10 = vrot.slane %v2991_v16, 2  ;;  %v3004_v59 = vrot.slane %v3003_v26, 4  ;;  %v2999_v20 = vrot.slane %v2998_v12, 2 }
 0xd13   : > { %v2981_v0 = vadd.f32 %v2980_v62, %v2979_v14  ;;  %v2993_v15 = vadd.f32 %v2992_v10, %v2991_v16  ;;  %v3005_v5 = vadd.f32 %v3004_v59, %v3003_v26  ;;  %v3000_v31 = vadd.f32 %v2999_v20, %v2998_v12 }
 0xd15   : > { %v3034_v38 = vsel %vm3033_vm8, %v2981_v0, %v3032_v43  ;;  %v2994_v46 = vrot.slane %v2993_v15, 1  ;;  %v3006_v50 = vrot.slane %v3005_v5, 2  ;;  %v3001_v35 = vrot.slane %v3000_v31, 1 }
 0xd16   : > { %v3036_v55 = vsel %vm3035_vm9, %v2988_v17, %v3034_v38 }
 0xd17   : > { %v2995_v1 = vadd.f32 %v2994_v46, %v2993_v15  ;;  %v3007_v42 = vadd.f32 %v3006_v50, %v3005_v5  ;;  %v3002_v48 = vadd.f32 %v3001_v35, %v3000_v31 }
 0xd19   : > { %v3008_v24 = vrot.slane %v3007_v42, 1  ;;  %v3038_v41 = vsel %vm3037_vm10, %v2995_v1, %v3036_v55 }
 0xd1a   : > { %v3040_v58 = vsel %vm3039_vm3, %v3002_v48, %v3038_v41 }
 0xd1b   : > { %v3009_v11 = vadd.f32 %v3008_v24, %v3007_v42 }
 0xd1d   : > { %v3042_v27 = vsel %vm3041_vm11, %v3009_v11, %v3040_v58 }
 0xd1e   : > { %3451 = vmatmul.mubr.msk.f32.vlgmr.msra.gmra.mrb[20].mxu1 %vm404_vm1, %v3042_v27 }
 0xdf1   : > { %v3111_v36 = vpop.f32.mrb[20].mxu1 }
 0xdf2   : > { %v3112_v30 = vadd.f32 %v3270_v22, %v3111_v36  ;;  %v3452_v19 = vpop.f32.mrb[21].mxu1 }
 0xdf4   : > { %3116 = vst.msk [vmem:[%s378_s18] sm:$0xff] %vm3115_vm12, %v3112_v30 }
 0xdf5   : > { %3641 = shalt.err (!%p3638_p9)
}
 0xdf6   : > { %s3642_s14 = scalar_lea.hbm %s4719_s15, 128  ;;  %s3646_s27 = scalar_lea.hbm %s4772_s9, 256 }
 0xdf7   : > { %p3643_p1 = scmp.ne.s32.totalorder %s4719_s15, %s3642_s14  ;;  %p3647_p11 = scmp.lt.u32.totalorder %s4719_s15, %s4772_s9 }
 0xdf8   : > { %p3648_p2 = scmp.lt.u32.totalorder %s3646_s27, %s3642_s14  ;;  %p3650_p6 = scmp.lt.u32.totalorder %s3642_s14, %s4719_s15 }
 0xdf9   : > { %p3644_p0 = pnand %p3643_p1, %p3854_p12 }
 0xdfa   : > { %p3649_p4 = por %p3648_p2, %p3647_p11 }
 0xdfb   : > { %p3645_p5 = pneg %p3644_p0 }
 0xdfc   : > { %p3651_p8 = por %p3650_p6, %p3649_p4 }
 0xdfe   : > { %p3652_p10 = pnand %p3651_p8, %p3645_p5 }
 0xe00   : > { %3655 = shalt.err (!%p3652_p10)
}
 0xe01   : > { %3479 = dma.vmem_to_hbm [thread:$0]  (%p3854_p12), %s4721_s24, 128, %s4719_s15, %s3118_s17  }
 0xe02 PF: > { %s4803_s19 = sld [smem:[#allocation11_spill]]  ;;  %s3143_s20 = sand.u32 1, %s3686_s30  }
 0xe03   : > { %p4805_p3 = scmp.ge.s32.totalorder %s3698_s12, 2  ;;  %s3144_s25 = scalar_lea.sflag [#allocation4], %s3143_s20 }
 0xe08   : > { %p4804_p13 = scmp.ne.s32.totalorder %s4803_s19, 0 }
 0xe0a   : > { %p3490_p7 = pnand %p4805_p3, %p4804_p13 }
 0xe0c   : > { %3681 = dma.done.wait (!%p3490_p7), %s3144_s25, 128  }
 0xe0d   : > { %3683 = vsyncadd (!%p3490_p7), %s3144_s25, 4294967168  ;;  %s4806_s12 = sld [smem:[#allocation12_spill]]  ;;  %s4807_s30 = smov %s3690_s10 }
 0xe0e   : > { %s4808_s10 = smov %s3694_s11  ;;  %s4809_s11 = smov %s3850_s28 }
 0xe13   : > { %p23_p9 = scmp.ge.s32.totalorder %s4806_s12, 4  }
 0xe15   :  { %25 = sbr.rel (!%p23_p9) target bundleno = 6 (0x6), region = 108 }
 0xe1c   :  { %3149 = vsyncpa [#allocation3], 1 }
 0xe1d   :  { %3151 = vsyncpa [#allocation3 + $0x1], 1 }
 0xe1e   :  { %3152 = vsyncpa [#allocation6], 1 }
 0xe1f   :  { %3153 = vsyncpa [#allocation4], 1 }
 0xe20   :  { %3155 = vsyncpa [#allocation4 + $0x1], 1 }

</bundles_post_ra>
